<compile_context>
chip_gen: v5e
topology: v5e:2x2
jax: 0.10.0
libtpu: 0.0.40
codegen_flags: <defaults>
</compile_context>

<pallas_src>
import jax
import jax.numpy as jnp
from jax import lax
from jax.experimental import pallas as pl
from jax.experimental.pallas import tpu as pltpu

# ----------------------------- model config ---------------------------------
VOCAB = 256          # synthetic vocab (multiple of 128 -> lane-dense logits)
D_MODEL = 32         # hidden size
N_HEAD = 4
HEAD_DIM = D_MODEL // N_HEAD          # 8
N_LAYER = 2
D_FF = 4 * D_MODEL                    # 128
LN_EPS = 1e-5
B = 2                # batch (number of "sentences")
T = 8                # sequence length after dropping last token
HT = N_HEAD * T      # 32: head-major stacked attention rows (r = head*T + t)


# ----------------------------- in-kernel helpers ----------------------------
def _layernorm(x, w, b):
    # single-pass statistics: mean and E[x^2]  (var = E[x^2] - mu^2)
    mu = jnp.mean(x, axis=-1, keepdims=True)
    ms = jnp.mean(x * x, axis=-1, keepdims=True)
    var = ms - mu * mu
    return (x - mu) * lax.rsqrt(var + LN_EPS) * w + b


def _gelu_new(x):
    # GPT-2 "gelu_new" (tanh approximation)
    c = 0.7978845608028654  # sqrt(2/pi)
    return 0.5 * x * (1.0 + jnp.tanh(c * (x + 0.044715 * x * x * x)))


def _softmax(s):
    m = jnp.max(s, axis=-1, keepdims=True)
    e = jnp.exp(s - m)
    # approx reciprocal -> EUP slot (divide would sit on the VPU)
    return e * pl.reciprocal(jnp.sum(e, axis=-1, keepdims=True), approx=True)


def _bf16(x):
    return x.astype(jnp.bfloat16)


# ----------------------------- fused forward kernel -------------------------
def fused_gpt_kernel(x_ref, bias_ref,
                     ln1w_ref, ln1b_ref, wqkv_ref, bqkv_ref, wo_ref, bo_ref,
                     ln2w_ref, ln2b_ref, wfc_ref, bfc_ref, wpr_ref, bpr_ref,
                     lnfw_ref, lnfb_ref, wtet_ref,
                     out_ref):
    x = x_ref[...]          # [T, D]     rows of one batch element (this grid step)
    bias = bias_ref[0]      # [HT, HT]   head-block-diagonal causal+padding additive mask

    for l in range(N_LAYER):                       # static unroll over layers
        # ---- attention sub-block ----
        h = _bf16(_layernorm(x, ln1w_ref[l], ln1b_ref[l]))
        # fused QKV projection: one [T,D]@[D,3D] MXU pass (Q scaling folded into weights)
        qkv = jnp.dot(h, wqkv_ref[l], preferred_element_type=jnp.float32) + bqkv_ref[l]
        # stack heads on the sublane (M) axis: rows r = head*T + t  -> [HT, HEAD_DIM]
        q = jnp.concatenate(
            [qkv[:, hh * HEAD_DIM:(hh + 1) * HEAD_DIM] for hh in range(N_HEAD)], axis=0)
        k = jnp.concatenate(
            [qkv[:, D_MODEL + hh * HEAD_DIM:D_MODEL + (hh + 1) * HEAD_DIM]
             for hh in range(N_HEAD)], axis=0)
        v = jnp.concatenate(
            [qkv[:, 2 * D_MODEL + hh * HEAD_DIM:2 * D_MODEL + (hh + 1) * HEAD_DIM]
             for hh in range(N_HEAD)], axis=0)
        # ONE score matmul for all heads (cross-head entries masked by `bias`);
        # dot_general contracts the last dims directly -> no in-kernel K transpose.
        s = lax.dot_general(_bf16(q), _bf16(k), (((1,), (1,)), ((), ())),
                            preferred_element_type=jnp.float32) + bias
        p = _softmax(s)                                                # [HT, HT] f32
        pv = jnp.dot(_bf16(p), _bf16(v),
                     preferred_element_type=jnp.float32)               # [HT, HEAD_DIM]
        # un-stack heads back onto lanes -> [T, D], then a single W_o matmul
        ctx = jnp.concatenate(
            [pv[hh * T:(hh + 1) * T, :] for hh in range(N_HEAD)], axis=1)
        x = x + jnp.dot(_bf16(ctx), wo_ref[l],
                        preferred_element_type=jnp.float32) + bo_ref[l]

        # ---- MLP sub-block ----
        h2 = _bf16(_layernorm(x, ln2w_ref[l], ln2b_ref[l]))
        m = jnp.dot(h2, wfc_ref[l], preferred_element_type=jnp.float32) + bfc_ref[l]
        m = _gelu_new(m)                                               # f32 elementwise
        x = x + jnp.dot(_bf16(m), wpr_ref[l],
                        preferred_element_type=jnp.float32) + bpr_ref[l]

    # ---- final LN + tied LM head (lane-dense [T, VOCAB] store) ----
    hf = _bf16(_layernorm(x, lnfw_ref[...], lnfb_ref[...]))
    out_ref[...] = jnp.dot(hf, wtet_ref[...], preferred_element_type=jnp.float32)


def run_fused_forward(x2d, bias3, kp):
    def full(a):  # whole array resident, constant index map -> DMA'd once across the grid
        return pl.BlockSpec(a.shape, lambda b, _nd=a.ndim: (0,) * _nd)

    in_specs = [
        pl.BlockSpec((T, D_MODEL), lambda b: (b, 0)),      # x rows of batch b
        pl.BlockSpec((1, HT, HT), lambda b: (b, 0, 0)),    # per-batch attention bias
        full(kp["ln1_w"]), full(kp["ln1_b"]),
        full(kp["w_qkv"]), full(kp["b_qkv"]),
        full(kp["w_o"]), full(kp["b_o"]),
        full(kp["ln2_w"]), full(kp["ln2_b"]),
        full(kp["w_fc"]), full(kp["b_fc"]),
        full(kp["w_pr"]), full(kp["b_pr"]),
        full(kp["lnf_w"]), full(kp["lnf_b"]),
        full(kp["wte_t"]),
    ]
    return pl.pallas_call(
        fused_gpt_kernel,
        out_shape=jax.ShapeDtypeStruct((B * T, VOCAB), jnp.float32),
        grid=(B,),                                          # batches are independent
        in_specs=in_specs,
        out_specs=pl.BlockSpec((T, VOCAB), lambda b: (b, 0)),
        compiler_params=pltpu.CompilerParams(
            dimension_semantics=("parallel",)),             # engage 2nd TC on v7x
    )(x2d, bias3,
      kp["ln1_w"], kp["ln1_b"], kp["w_qkv"], kp["b_qkv"], kp["w_o"], kp["b_o"],
      kp["ln2_w"], kp["ln2_b"], kp["w_fc"], kp["b_fc"], kp["w_pr"], kp["b_pr"],
      kp["lnf_w"], kp["lnf_b"], kp["wte_t"])


# ----------------------------- parameter init (deterministic) ---------------
def init_params(key):
    keys = iter(jax.random.split(key, 64))

    def nrm(shape, std=0.02):
        return (std * jax.random.normal(next(keys), shape)).astype(jnp.float32)

    params = {
        "wte": nrm((VOCAB, D_MODEL)),
        "wpe": nrm((1024, D_MODEL), std=0.01),
        "lnf_w": 1.0 + nrm((1, D_MODEL), std=0.1),
        "lnf_b": nrm((1, D_MODEL)),
        "layers": [],
    }
    for _ in range(N_LAYER):
        params["layers"].append({
            "ln1_w": 1.0 + nrm((1, D_MODEL), std=0.1),
            "ln1_b": nrm((1, D_MODEL)),
            "w_q": nrm((D_MODEL, D_MODEL)), "b_q": nrm((1, D_MODEL)),
            "w_k": nrm((D_MODEL, D_MODEL)), "b_k": nrm((1, D_MODEL)),
            "w_v": nrm((D_MODEL, D_MODEL)), "b_v": nrm((1, D_MODEL)),
            "w_o": nrm((D_MODEL, D_MODEL)), "b_o": nrm((1, D_MODEL)),
            "ln2_w": 1.0 + nrm((1, D_MODEL), std=0.1),
            "ln2_b": nrm((1, D_MODEL)),
            "w_fc": nrm((D_MODEL, D_FF)), "b_fc": nrm((1, D_FF)),
            "w_pr": nrm((D_FF, D_MODEL)), "b_pr": nrm((1, D_MODEL)),
        })
    return params


def pack_params(params):
    """One-time re-layout: fused lane-dense QKV, bf16 matmul weights, f32 bias/LN params.
    The 1/sqrt(head_dim) attention scale is folded into the Q columns here (free)."""
    L = params["layers"]
    sc = 1.0 / (HEAD_DIM ** 0.5)

    def stack(name):                                    # -> [N_LAYER, ...] f32
        return jnp.stack([lp[name] for lp in L]).astype(jnp.float32)

    w_qkv = jnp.stack([jnp.concatenate([lp["w_q"] * sc, lp["w_k"], lp["w_v"]], axis=1)
                       for lp in L])                    # [N_LAYER, D, 3D]
    b_qkv = jnp.stack([jnp.concatenate([lp["b_q"] * sc, lp["b_k"], lp["b_v"]], axis=1)
                       for lp in L])                    # [N_LAYER, 1, 3D]

    return {
        "ln1_w": stack("ln1_w"), "ln1_b": stack("ln1_b"),
        "w_qkv": w_qkv.astype(jnp.bfloat16), "b_qkv": b_qkv.astype(jnp.float32),
        "w_o": stack("w_o").astype(jnp.bfloat16), "b_o": stack("b_o"),
        "ln2_w": stack("ln2_w"), "ln2_b": stack("ln2_b"),
        "w_fc": stack("w_fc").astype(jnp.bfloat16), "b_fc": stack("b_fc"),
        "w_pr": stack("w_pr").astype(jnp.bfloat16), "b_pr": stack("b_pr"),
        "lnf_w": params["lnf_w"].astype(jnp.float32),
        "lnf_b": params["lnf_b"].astype(jnp.float32),
        "wte_t": params["wte"].T.astype(jnp.bfloat16),   # [D, VOCAB], transposed once
    }


# ----------------------------- full forward ---------------------------------
@jax.jit
def gpt_forward(token_ids, attention_mask_full, wte, wpe, kernel_params):
    """Mirrors GPTModel.forward:
       labels    = tokens[:, 1:]
       input_ids = tokens[:, :-1]
       attn_mask = mask[:, :-1]
       logits    = GPT2LMHeadModel(input_ids, attention_mask)
       returns (logits, labels)
    """
    labels = token_ids[:, 1:]                                    # [B, T]
    input_ids = token_ids[:, :-1]                                # [B, T]
    attn_mask = attention_mask_full[:, :-1].astype(jnp.float32)  # [B, T]

    # embeddings (glue: gather), flattened to [B*T, D]
    tok_emb = wte[input_ids]                                     # [B, T, D]
    pos_emb = wpe[:T][None]                                      # [1, T, D]
    x2d = (tok_emb + pos_emb).astype(jnp.float32).reshape(B * T, D_MODEL)

    # per-batch head-block-diagonal additive bias over head-major stacked rows
    # (row r = head*T + t):  allowed iff same head AND causal AND key not padded.
    t_idx = jnp.arange(HT) % T
    h_idx = jnp.arange(HT) // T
    same_head = h_idx[:, None] == h_idx[None, :]
    causal = t_idx[None, :] <= t_idx[:, None]
    key_ok = attn_mask[:, t_idx] > 0                              # [B, HT]
    allowed = same_head[None] & causal[None] & key_ok[:, None, :]  # [B, HT, HT]
    bias3 = jnp.where(allowed, 0.0, -1e9).astype(jnp.float32)

    logits = run_fused_forward(x2d, bias3, kernel_params)        # [B*T, VOCAB]
    return logits.reshape(B, T, VOCAB), labels


# ----------------------------- pure-JAX reference ---------------------------
def _ref_forward(token_ids, attention_mask_full, params):
    labels = token_ids[:, 1:]
    input_ids = token_ids[:, :-1]
    attn_mask = attention_mask_full[:, :-1].astype(jnp.float32)
    x = params["wte"][input_ids] + params["wpe"][:T][None]
    causal = jnp.where(jnp.tril(jnp.ones((T, T))) > 0, 0.0, -1e9)
    bias = causal[None] + (1.0 - attn_mask)[:, None, :] * (-1e9)   # [B, T, T]

    def ln(x, w, b):
        mu = x.mean(-1, keepdims=True)
        var = ((x - mu) ** 2).mean(-1, keepdims=True)
        return (x - mu) * jax.lax.rsqrt(var + LN_EPS) * w + b

    def gelu(x):
        return 0.5 * x * (1 + jnp.tanh(0.7978845608028654 * (x + 0.044715 * x ** 3)))

    def heads(a):
        return a.reshape(B, T, N_HEAD, HEAD_DIM).transpose(0, 2, 1, 3)

    for p in params["layers"]:
        h = ln(x, p["ln1_w"], p["ln1_b"])
        q = heads(h @ p["w_q"] + p["b_q"])
        k = heads(h @ p["w_k"] + p["b_k"])
        v = heads(h @ p["w_v"] + p["b_v"])
        s = jnp.einsum("bhqd,bhkd->bhqk", q, k) / (HEAD_DIM ** 0.5) + bias[:, None]
        pa = jax.nn.softmax(s, axis=-1)
        a = jnp.einsum("bhqk,bhkd->bhqd", pa, v).transpose(0, 2, 1, 3).reshape(B, T, D_MODEL)
        x = x + a @ p["w_o"] + p["b_o"]
        h2 = ln(x, p["ln2_w"], p["ln2_b"])
        x = x + gelu(h2 @ p["w_fc"] + p["b_fc"]) @ p["w_pr"] + p["b_pr"]
    logits = ln(x, params["lnf_w"], params["lnf_b"]) @ params["wte"].T
    return logits, labels


# ----------------------------- main ------------------------------------------
if __name__ == "__main__":
    key = jax.random.PRNGKey(0)
    k_tok, k_par = jax.random.split(key)

    # synthetic "tokenized sentences": [B, T+1] ids, mask all ones
    # TODO(synk): real GPT2Tokenizer has no tensor semantics; ids are synthesized.
    token_ids = jax.random.randint(k_tok, (B, T + 1), 0, VOCAB, dtype=jnp.int32)
    attention_mask_full = jnp.ones((B, T + 1), jnp.int32)

    params = init_params(k_par)
    kernel_params = pack_params(params)        # one-time kernel-layout packing

    logits, labels = gpt_forward(token_ids, attention_mask_full,
                                 params["wte"], params["wpe"], kernel_params)
    jax.block_until_ready(logits)
    jax.block_until_ready(labels)

    # correctness check vs pure-f32 reference (tolerance covers bf16 matmul inputs
    # and the approx softmax reciprocal)
    ref_logits, ref_labels = _ref_forward(token_ids, attention_mask_full, params)
    assert logits.shape == (B, T, VOCAB) and labels.shape == (B, T)
    assert jnp.array_equal(labels, ref_labels)
    assert jnp.allclose(logits, ref_logits, atol=2e-2, rtol=2e-2)

    print("KERNEL_OK")
</pallas_src>

<mosaic_0001>
module attributes {stable_mosaic.version = 11 : i64} {
  func.func @fused_gpt_kernel(%arg0: i32, %arg1: memref<8x32xf32, #tpu.memory_space<vmem>>, %arg2: memref<1x32x32xf32, #tpu.memory_space<vmem>>, %arg3: memref<2x1x32xf32, #tpu.memory_space<vmem>>, %arg4: memref<2x1x32xf32, #tpu.memory_space<vmem>>, %arg5: memref<2x32x96xbf16, #tpu.memory_space<vmem>>, %arg6: memref<2x1x96xf32, #tpu.memory_space<vmem>>, %arg7: memref<2x32x32xbf16, #tpu.memory_space<vmem>>, %arg8: memref<2x1x32xf32, #tpu.memory_space<vmem>>, %arg9: memref<2x1x32xf32, #tpu.memory_space<vmem>>, %arg10: memref<2x1x32xf32, #tpu.memory_space<vmem>>, %arg11: memref<2x32x128xbf16, #tpu.memory_space<vmem>>, %arg12: memref<2x1x128xf32, #tpu.memory_space<vmem>>, %arg13: memref<2x128x32xbf16, #tpu.memory_space<vmem>>, %arg14: memref<2x1x32xf32, #tpu.memory_space<vmem>>, %arg15: memref<1x32xf32, #tpu.memory_space<vmem>>, %arg16: memref<1x32xf32, #tpu.memory_space<vmem>>, %arg17: memref<32x256xbf16, #tpu.memory_space<vmem>>, %arg18: memref<8x256xf32, #tpu.memory_space<vmem>>) attributes {dimension_semantics = [#tpu.dimension_semantics<parallel>], iteration_bounds = array<i64: 2>, scalar_prefetch = 0 : i64, scratch_operands = 0 : i64, tpu.core_type = #tpu.core_type<tc>, window_params = [{transform_indices = @transform_0, window_bounds = array<i64: 8, 32>}, {transform_indices = @transform_1, window_bounds = array<i64: 1, 32, 32>}, {pipeline_mode = #tpu.pipeline_mode<synchronous>, transform_indices = @transform_2, window_bounds = array<i64: 2, 1, 32>}, {pipeline_mode = #tpu.pipeline_mode<synchronous>, transform_indices = @transform_3, window_bounds = array<i64: 2, 1, 32>}, {pipeline_mode = #tpu.pipeline_mode<synchronous>, transform_indices = @transform_4, window_bounds = array<i64: 2, 32, 96>}, {pipeline_mode = #tpu.pipeline_mode<synchronous>, transform_indices = @transform_5, window_bounds = array<i64: 2, 1, 96>}, {pipeline_mode = #tpu.pipeline_mode<synchronous>, transform_indices = @transform_6, window_bounds = array<i64: 2, 32, 32>}, {pipeline_mode = #tpu.pipeline_mode<synchronous>, transform_indices = @transform_7, window_bounds = array<i64: 2, 1, 32>}, {pipeline_mode = #tpu.pipeline_mode<synchronous>, transform_indices = @transform_8, window_bounds = array<i64: 2, 1, 32>}, {pipeline_mode = #tpu.pipeline_mode<synchronous>, transform_indices = @transform_9, window_bounds = array<i64: 2, 1, 32>}, {pipeline_mode = #tpu.pipeline_mode<synchronous>, transform_indices = @transform_10, window_bounds = array<i64: 2, 32, 128>}, {pipeline_mode = #tpu.pipeline_mode<synchronous>, transform_indices = @transform_11, window_bounds = array<i64: 2, 1, 128>}, {pipeline_mode = #tpu.pipeline_mode<synchronous>, transform_indices = @transform_12, window_bounds = array<i64: 2, 128, 32>}, {pipeline_mode = #tpu.pipeline_mode<synchronous>, transform_indices = @transform_13, window_bounds = array<i64: 2, 1, 32>}, {pipeline_mode = #tpu.pipeline_mode<synchronous>, transform_indices = @transform_14, window_bounds = array<i64: 1, 32>}, {pipeline_mode = #tpu.pipeline_mode<synchronous>, transform_indices = @transform_15, window_bounds = array<i64: 1, 32>}, {pipeline_mode = #tpu.pipeline_mode<synchronous>, transform_indices = @transform_16, window_bounds = array<i64: 32, 256>}, {transform_indices = @transform_17, window_bounds = array<i64: 8, 256>}]} {
    %c0 = arith.constant 0 : index
    %c0_0 = arith.constant 0 : index
    %0 = vector.load %arg1[%c0, %c0_0] : memref<8x32xf32, #tpu.memory_space<vmem>>, vector<8x32xf32>
    %c0_1 = arith.constant 0 : index
    %c0_2 = arith.constant 0 : index
    %c0_3 = arith.constant 0 : index
    %1 = vector.load %arg2[%c0_1, %c0_2, %c0_3] : memref<1x32x32xf32, #tpu.memory_space<vmem>>, vector<1x32x32xf32>
    %2 = vector.shape_cast %1 : vector<1x32x32xf32> to vector<32x32xf32>
    %c0_4 = arith.constant 0 : index
    %c0_5 = arith.constant 0 : index
    %c0_6 = arith.constant 0 : index
    %3 = vector.load %arg3[%c0_4, %c0_5, %c0_6] : memref<2x1x32xf32, #tpu.memory_space<vmem>>, vector<1x1x32xf32>
    %4 = vector.shape_cast %3 : vector<1x1x32xf32> to vector<1x32xf32>
    %c0_7 = arith.constant 0 : index
    %c0_8 = arith.constant 0 : index
    %c0_9 = arith.constant 0 : index
    %5 = vector.load %arg4[%c0_7, %c0_8, %c0_9] : memref<2x1x32xf32, #tpu.memory_space<vmem>>, vector<1x1x32xf32>
    %6 = vector.shape_cast %5 : vector<1x1x32xf32> to vector<1x32xf32>
    %cst = arith.constant dense<0.000000e+00> : vector<8xf32>
    %7 = vector.multi_reduction <add>, %0, %cst [1] : vector<8x32xf32> to vector<8xf32>
    %8 = vector.shape_cast %7 : vector<8xf32> to vector<8x1xf32>
    %cst_10 = arith.constant 3.200000e+01 : f32
    %9 = vector.broadcast %cst_10 : f32 to vector<8x1xf32>
    %10 = arith.divf %8, %9 : vector<8x1xf32>
    %11 = arith.mulf %0, %0 : vector<8x32xf32>
    %cst_11 = arith.constant dense<0.000000e+00> : vector<8xf32>
    %12 = vector.multi_reduction <add>, %11, %cst_11 [1] : vector<8x32xf32> to vector<8xf32>
    %13 = vector.shape_cast %12 : vector<8xf32> to vector<8x1xf32>
    %cst_12 = arith.constant 3.200000e+01 : f32
    %14 = vector.broadcast %cst_12 : f32 to vector<8x1xf32>
    %15 = arith.divf %13, %14 : vector<8x1xf32>
    %16 = arith.mulf %10, %10 : vector<8x1xf32>
    %17 = arith.subf %15, %16 : vector<8x1xf32>
    %18 = vector.broadcast %10 : vector<8x1xf32> to vector<8x32xf32>
    %19 = arith.subf %0, %18 : vector<8x32xf32>
    %cst_13 = arith.constant 9.99999974E-6 : f32
    %20 = vector.broadcast %cst_13 : f32 to vector<8x1xf32>
    %21 = arith.addf %17, %20 : vector<8x1xf32>
    %22 = math.rsqrt %21 : vector<8x1xf32>
    %23 = vector.broadcast %22 : vector<8x1xf32> to vector<8x32xf32>
    %24 = arith.mulf %19, %23 : vector<8x32xf32>
    %25 = vector.broadcast %4 : vector<1x32xf32> to vector<8x32xf32>
    %26 = arith.mulf %24, %25 : vector<8x32xf32>
    %27 = vector.broadcast %6 : vector<1x32xf32> to vector<8x32xf32>
    %28 = arith.addf %26, %27 : vector<8x32xf32>
    %29 = arith.truncf %28 : vector<8x32xf32> to vector<8x32xbf16>
    %c0_14 = arith.constant 0 : index
    %c0_15 = arith.constant 0 : index
    %c0_16 = arith.constant 0 : index
    %30 = vector.load %arg5[%c0_14, %c0_15, %c0_16] : memref<2x32x96xbf16, #tpu.memory_space<vmem>>, vector<1x32x96xbf16>
    %31 = vector.shape_cast %30 : vector<1x32x96xbf16> to vector<32x96xbf16>
    %cst_17 = arith.constant dense<0.000000e+00> : vector<8x96xf32>
    %32 = tpu.matmul %29, %31, %cst_17 {dimension_numbers = #tpu.dot_dimension_numbers<[1], [0], [0], [1], [0, 0, 1, 1], [], []>} : vector<8x32xbf16>, vector<32x96xbf16>, vector<8x96xf32> -> vector<8x96xf32>
    %c0_18 = arith.constant 0 : index
    %c0_19 = arith.constant 0 : index
    %c0_20 = arith.constant 0 : index
    %33 = vector.load %arg6[%c0_18, %c0_19, %c0_20] : memref<2x1x96xf32, #tpu.memory_space<vmem>>, vector<1x1x96xf32>
    %34 = vector.shape_cast %33 : vector<1x1x96xf32> to vector<1x96xf32>
    %35 = vector.broadcast %34 : vector<1x96xf32> to vector<8x96xf32>
    %36 = arith.addf %32, %35 : vector<8x96xf32>
    %37 = vector.extract_strided_slice %36 {offsets = [0, 0], sizes = [8, 8], strides = [1, 1]} : vector<8x96xf32> to vector<8x8xf32>
    %38 = vector.extract_strided_slice %36 {offsets = [0, 8], sizes = [8, 8], strides = [1, 1]} : vector<8x96xf32> to vector<8x8xf32>
    %39 = vector.extract_strided_slice %36 {offsets = [0, 16], sizes = [8, 8], strides = [1, 1]} : vector<8x96xf32> to vector<8x8xf32>
    %40 = vector.extract_strided_slice %36 {offsets = [0, 24], sizes = [8, 8], strides = [1, 1]} : vector<8x96xf32> to vector<8x8xf32>
    %41 = tpu.concatenate %37, %38, %39, %40 in 0 : vector<8x8xf32>, vector<8x8xf32>, vector<8x8xf32>, vector<8x8xf32> -> vector<32x8xf32>
    %42 = vector.extract_strided_slice %36 {offsets = [0, 32], sizes = [8, 8], strides = [1, 1]} : vector<8x96xf32> to vector<8x8xf32>
    %43 = vector.extract_strided_slice %36 {offsets = [0, 40], sizes = [8, 8], strides = [1, 1]} : vector<8x96xf32> to vector<8x8xf32>
    %44 = vector.extract_strided_slice %36 {offsets = [0, 48], sizes = [8, 8], strides = [1, 1]} : vector<8x96xf32> to vector<8x8xf32>
    %45 = vector.extract_strided_slice %36 {offsets = [0, 56], sizes = [8, 8], strides = [1, 1]} : vector<8x96xf32> to vector<8x8xf32>
    %46 = tpu.concatenate %42, %43, %44, %45 in 0 : vector<8x8xf32>, vector<8x8xf32>, vector<8x8xf32>, vector<8x8xf32> -> vector<32x8xf32>
    %47 = vector.extract_strided_slice %36 {offsets = [0, 64], sizes = [8, 8], strides = [1, 1]} : vector<8x96xf32> to vector<8x8xf32>
    %48 = vector.extract_strided_slice %36 {offsets = [0, 72], sizes = [8, 8], strides = [1, 1]} : vector<8x96xf32> to vector<8x8xf32>
    %49 = vector.extract_strided_slice %36 {offsets = [0, 80], sizes = [8, 8], strides = [1, 1]} : vector<8x96xf32> to vector<8x8xf32>
    %50 = vector.extract_strided_slice %36 {offsets = [0, 88], sizes = [8, 8], strides = [1, 1]} : vector<8x96xf32> to vector<8x8xf32>
    %51 = tpu.concatenate %47, %48, %49, %50 in 0 : vector<8x8xf32>, vector<8x8xf32>, vector<8x8xf32>, vector<8x8xf32> -> vector<32x8xf32>
    %52 = arith.truncf %41 : vector<32x8xf32> to vector<32x8xbf16>
    %53 = arith.truncf %46 : vector<32x8xf32> to vector<32x8xbf16>
    %cst_21 = arith.constant dense<0.000000e+00> : vector<32x32xf32>
    %54 = tpu.matmul %52, %53, %cst_21 {dimension_numbers = #tpu.dot_dimension_numbers<[1], [1], [0], [0], [0, 0, 1, 0], [], []>} : vector<32x8xbf16>, vector<32x8xbf16>, vector<32x32xf32> -> vector<32x32xf32>
    %55 = arith.addf %54, %2 : vector<32x32xf32>
    %cst_22 = arith.constant dense<0xFF800000> : vector<32xf32>
    %56 = vector.multi_reduction <maximumf>, %55, %cst_22 [1] : vector<32x32xf32> to vector<32xf32>
    %57 = vector.shape_cast %56 : vector<32xf32> to vector<32x1xf32>
    %58 = vector.broadcast %57 : vector<32x1xf32> to vector<32x32xf32>
    %59 = arith.subf %55, %58 : vector<32x32xf32>
    %60 = math.exp %59 : vector<32x32xf32>
    %cst_23 = arith.constant dense<0.000000e+00> : vector<32xf32>
    %61 = vector.multi_reduction <add>, %60, %cst_23 [1] : vector<32x32xf32> to vector<32xf32>
    %62 = vector.shape_cast %61 : vector<32xf32> to vector<32x1xf32>
    %63 = tpu.reciprocal %62 {approx = true} : vector<32x1xf32> -> vector<32x1xf32>
    %64 = vector.broadcast %63 : vector<32x1xf32> to vector<32x32xf32>
    %65 = arith.mulf %60, %64 : vector<32x32xf32>
    %66 = arith.truncf %65 : vector<32x32xf32> to vector<32x32xbf16>
    %67 = arith.truncf %51 : vector<32x8xf32> to vector<32x8xbf16>
    %cst_24 = arith.constant dense<0.000000e+00> : vector<32x8xf32>
    %68 = tpu.matmul %66, %67, %cst_24 {dimension_numbers = #tpu.dot_dimension_numbers<[1], [0], [0], [1], [0, 0, 1, 1], [], []>} : vector<32x32xbf16>, vector<32x8xbf16>, vector<32x8xf32> -> vector<32x8xf32>
    %69 = vector.extract_strided_slice %68 {offsets = [0, 0], sizes = [8, 8], strides = [1, 1]} : vector<32x8xf32> to vector<8x8xf32>
    %70 = vector.extract_strided_slice %68 {offsets = [8, 0], sizes = [8, 8], strides = [1, 1]} : vector<32x8xf32> to vector<8x8xf32>
    %71 = vector.extract_strided_slice %68 {offsets = [16, 0], sizes = [8, 8], strides = [1, 1]} : vector<32x8xf32> to vector<8x8xf32>
    %72 = vector.extract_strided_slice %68 {offsets = [24, 0], sizes = [8, 8], strides = [1, 1]} : vector<32x8xf32> to vector<8x8xf32>
    %73 = tpu.concatenate %69, %70, %71, %72 in 1 : vector<8x8xf32>, vector<8x8xf32>, vector<8x8xf32>, vector<8x8xf32> -> vector<8x32xf32>
    %74 = arith.truncf %73 : vector<8x32xf32> to vector<8x32xbf16>
    %c0_25 = arith.constant 0 : index
    %c0_26 = arith.constant 0 : index
    %c0_27 = arith.constant 0 : index
    %75 = vector.load %arg7[%c0_25, %c0_26, %c0_27] : memref<2x32x32xbf16, #tpu.memory_space<vmem>>, vector<1x32x32xbf16>
    %76 = vector.shape_cast %75 : vector<1x32x32xbf16> to vector<32x32xbf16>
    %cst_28 = arith.constant dense<0.000000e+00> : vector<8x32xf32>
    %77 = tpu.matmul %74, %76, %cst_28 {dimension_numbers = #tpu.dot_dimension_numbers<[1], [0], [0], [1], [0, 0, 1, 1], [], []>} : vector<8x32xbf16>, vector<32x32xbf16>, vector<8x32xf32> -> vector<8x32xf32>
    %78 = arith.addf %0, %77 : vector<8x32xf32>
    %c0_29 = arith.constant 0 : index
    %c0_30 = arith.constant 0 : index
    %c0_31 = arith.constant 0 : index
    %79 = vector.load %arg8[%c0_29, %c0_30, %c0_31] : memref<2x1x32xf32, #tpu.memory_space<vmem>>, vector<1x1x32xf32>
    %80 = vector.shape_cast %79 : vector<1x1x32xf32> to vector<1x32xf32>
    %81 = vector.broadcast %80 : vector<1x32xf32> to vector<8x32xf32>
    %82 = arith.addf %78, %81 : vector<8x32xf32>
    %c0_32 = arith.constant 0 : index
    %c0_33 = arith.constant 0 : index
    %c0_34 = arith.constant 0 : index
    %83 = vector.load %arg9[%c0_32, %c0_33, %c0_34] : memref<2x1x32xf32, #tpu.memory_space<vmem>>, vector<1x1x32xf32>
    %84 = vector.shape_cast %83 : vector<1x1x32xf32> to vector<1x32xf32>
    %c0_35 = arith.constant 0 : index
    %c0_36 = arith.constant 0 : index
    %c0_37 = arith.constant 0 : index
    %85 = vector.load %arg10[%c0_35, %c0_36, %c0_37] : memref<2x1x32xf32, #tpu.memory_space<vmem>>, vector<1x1x32xf32>
    %86 = vector.shape_cast %85 : vector<1x1x32xf32> to vector<1x32xf32>
    %cst_38 = arith.constant dense<0.000000e+00> : vector<8xf32>
    %87 = vector.multi_reduction <add>, %82, %cst_38 [1] : vector<8x32xf32> to vector<8xf32>
    %88 = vector.shape_cast %87 : vector<8xf32> to vector<8x1xf32>
    %cst_39 = arith.constant 3.200000e+01 : f32
    %89 = vector.broadcast %cst_39 : f32 to vector<8x1xf32>
    %90 = arith.divf %88, %89 : vector<8x1xf32>
    %91 = arith.mulf %82, %82 : vector<8x32xf32>
    %cst_40 = arith.constant dense<0.000000e+00> : vector<8xf32>
    %92 = vector.multi_reduction <add>, %91, %cst_40 [1] : vector<8x32xf32> to vector<8xf32>
    %93 = vector.shape_cast %92 : vector<8xf32> to vector<8x1xf32>
    %cst_41 = arith.constant 3.200000e+01 : f32
    %94 = vector.broadcast %cst_41 : f32 to vector<8x1xf32>
    %95 = arith.divf %93, %94 : vector<8x1xf32>
    %96 = arith.mulf %90, %90 : vector<8x1xf32>
    %97 = arith.subf %95, %96 : vector<8x1xf32>
    %98 = vector.broadcast %90 : vector<8x1xf32> to vector<8x32xf32>
    %99 = arith.subf %82, %98 : vector<8x32xf32>
    %cst_42 = arith.constant 9.99999974E-6 : f32
    %100 = vector.broadcast %cst_42 : f32 to vector<8x1xf32>
    %101 = arith.addf %97, %100 : vector<8x1xf32>
    %102 = math.rsqrt %101 : vector<8x1xf32>
    %103 = vector.broadcast %102 : vector<8x1xf32> to vector<8x32xf32>
    %104 = arith.mulf %99, %103 : vector<8x32xf32>
    %105 = vector.broadcast %84 : vector<1x32xf32> to vector<8x32xf32>
    %106 = arith.mulf %104, %105 : vector<8x32xf32>
    %107 = vector.broadcast %86 : vector<1x32xf32> to vector<8x32xf32>
    %108 = arith.addf %106, %107 : vector<8x32xf32>
    %109 = arith.truncf %108 : vector<8x32xf32> to vector<8x32xbf16>
    %c0_43 = arith.constant 0 : index
    %c0_44 = arith.constant 0 : index
    %c0_45 = arith.constant 0 : index
    %110 = vector.load %arg11[%c0_43, %c0_44, %c0_45] : memref<2x32x128xbf16, #tpu.memory_space<vmem>>, vector<1x32x128xbf16>
    %111 = vector.shape_cast %110 : vector<1x32x128xbf16> to vector<32x128xbf16>
    %cst_46 = arith.constant dense<0.000000e+00> : vector<8x128xf32>
    %112 = tpu.matmul %109, %111, %cst_46 {dimension_numbers = #tpu.dot_dimension_numbers<[1], [0], [0], [1], [0, 0, 1, 1], [], []>} : vector<8x32xbf16>, vector<32x128xbf16>, vector<8x128xf32> -> vector<8x128xf32>
    %c0_47 = arith.constant 0 : index
    %c0_48 = arith.constant 0 : index
    %c0_49 = arith.constant 0 : index
    %113 = vector.load %arg12[%c0_47, %c0_48, %c0_49] : memref<2x1x128xf32, #tpu.memory_space<vmem>>, vector<1x1x128xf32>
    %114 = vector.shape_cast %113 : vector<1x1x128xf32> to vector<1x128xf32>
    %115 = vector.broadcast %114 : vector<1x128xf32> to vector<8x128xf32>
    %116 = arith.addf %112, %115 : vector<8x128xf32>
    %cst_50 = arith.constant 5.000000e-01 : f32
    %117 = vector.broadcast %cst_50 : f32 to vector<8x128xf32>
    %118 = arith.mulf %117, %116 : vector<8x128xf32>
    %cst_51 = arith.constant 4.471500e-02 : f32
    %119 = vector.broadcast %cst_51 : f32 to vector<8x128xf32>
    %120 = arith.mulf %119, %116 : vector<8x128xf32>
    %121 = arith.mulf %120, %116 : vector<8x128xf32>
    %122 = arith.mulf %121, %116 : vector<8x128xf32>
    %123 = arith.addf %116, %122 : vector<8x128xf32>
    %cst_52 = arith.constant 0.797884583 : f32
    %124 = vector.broadcast %cst_52 : f32 to vector<8x128xf32>
    %125 = arith.mulf %124, %123 : vector<8x128xf32>
    %126 = math.tanh %125 : vector<8x128xf32>
    %cst_53 = arith.constant 1.000000e+00 : f32
    %127 = vector.broadcast %cst_53 : f32 to vector<8x128xf32>
    %128 = arith.addf %127, %126 : vector<8x128xf32>
    %129 = arith.mulf %118, %128 : vector<8x128xf32>
    %130 = arith.truncf %129 : vector<8x128xf32> to vector<8x128xbf16>
    %c0_54 = arith.constant 0 : index
    %c0_55 = arith.constant 0 : index
    %c0_56 = arith.constant 0 : index
    %131 = vector.load %arg13[%c0_54, %c0_55, %c0_56] : memref<2x128x32xbf16, #tpu.memory_space<vmem>>, vector<1x128x32xbf16>
    %132 = vector.shape_cast %131 : vector<1x128x32xbf16> to vector<128x32xbf16>
    %cst_57 = arith.constant dense<0.000000e+00> : vector<8x32xf32>
    %133 = tpu.matmul %130, %132, %cst_57 {dimension_numbers = #tpu.dot_dimension_numbers<[1], [0], [0], [1], [0, 0, 1, 1], [], []>} : vector<8x128xbf16>, vector<128x32xbf16>, vector<8x32xf32> -> vector<8x32xf32>
    %134 = arith.addf %82, %133 : vector<8x32xf32>
    %c0_58 = arith.constant 0 : index
    %c0_59 = arith.constant 0 : index
    %c0_60 = arith.constant 0 : index
    %135 = vector.load %arg14[%c0_58, %c0_59, %c0_60] : memref<2x1x32xf32, #tpu.memory_space<vmem>>, vector<1x1x32xf32>
    %136 = vector.shape_cast %135 : vector<1x1x32xf32> to vector<1x32xf32>
    %137 = vector.broadcast %136 : vector<1x32xf32> to vector<8x32xf32>
    %138 = arith.addf %134, %137 : vector<8x32xf32>
    %c1 = arith.constant 1 : index
    %c0_61 = arith.constant 0 : index
    %c0_62 = arith.constant 0 : index
    %139 = vector.load %arg3[%c1, %c0_61, %c0_62] : memref<2x1x32xf32, #tpu.memory_space<vmem>>, vector<1x1x32xf32>
    %140 = vector.shape_cast %139 : vector<1x1x32xf32> to vector<1x32xf32>
    %c1_63 = arith.constant 1 : index
    %c0_64 = arith.constant 0 : index
    %c0_65 = arith.constant 0 : index
    %141 = vector.load %arg4[%c1_63, %c0_64, %c0_65] : memref<2x1x32xf32, #tpu.memory_space<vmem>>, vector<1x1x32xf32>
    %142 = vector.shape_cast %141 : vector<1x1x32xf32> to vector<1x32xf32>
    %cst_66 = arith.constant dense<0.000000e+00> : vector<8xf32>
    %143 = vector.multi_reduction <add>, %138, %cst_66 [1] : vector<8x32xf32> to vector<8xf32>
    %144 = vector.shape_cast %143 : vector<8xf32> to vector<8x1xf32>
    %cst_67 = arith.constant 3.200000e+01 : f32
    %145 = vector.broadcast %cst_67 : f32 to vector<8x1xf32>
    %146 = arith.divf %144, %145 : vector<8x1xf32>
    %147 = arith.mulf %138, %138 : vector<8x32xf32>
    %cst_68 = arith.constant dense<0.000000e+00> : vector<8xf32>
    %148 = vector.multi_reduction <add>, %147, %cst_68 [1] : vector<8x32xf32> to vector<8xf32>
    %149 = vector.shape_cast %148 : vector<8xf32> to vector<8x1xf32>
    %cst_69 = arith.constant 3.200000e+01 : f32
    %150 = vector.broadcast %cst_69 : f32 to vector<8x1xf32>
    %151 = arith.divf %149, %150 : vector<8x1xf32>
    %152 = arith.mulf %146, %146 : vector<8x1xf32>
    %153 = arith.subf %151, %152 : vector<8x1xf32>
    %154 = vector.broadcast %146 : vector<8x1xf32> to vector<8x32xf32>
    %155 = arith.subf %138, %154 : vector<8x32xf32>
    %cst_70 = arith.constant 9.99999974E-6 : f32
    %156 = vector.broadcast %cst_70 : f32 to vector<8x1xf32>
    %157 = arith.addf %153, %156 : vector<8x1xf32>
    %158 = math.rsqrt %157 : vector<8x1xf32>
    %159 = vector.broadcast %158 : vector<8x1xf32> to vector<8x32xf32>
    %160 = arith.mulf %155, %159 : vector<8x32xf32>
    %161 = vector.broadcast %140 : vector<1x32xf32> to vector<8x32xf32>
    %162 = arith.mulf %160, %161 : vector<8x32xf32>
    %163 = vector.broadcast %142 : vector<1x32xf32> to vector<8x32xf32>
    %164 = arith.addf %162, %163 : vector<8x32xf32>
    %165 = arith.truncf %164 : vector<8x32xf32> to vector<8x32xbf16>
    %c1_71 = arith.constant 1 : index
    %c0_72 = arith.constant 0 : index
    %c0_73 = arith.constant 0 : index
    %166 = vector.load %arg5[%c1_71, %c0_72, %c0_73] : memref<2x32x96xbf16, #tpu.memory_space<vmem>>, vector<1x32x96xbf16>
    %167 = vector.shape_cast %166 : vector<1x32x96xbf16> to vector<32x96xbf16>
    %cst_74 = arith.constant dense<0.000000e+00> : vector<8x96xf32>
    %168 = tpu.matmul %165, %167, %cst_74 {dimension_numbers = #tpu.dot_dimension_numbers<[1], [0], [0], [1], [0, 0, 1, 1], [], []>} : vector<8x32xbf16>, vector<32x96xbf16>, vector<8x96xf32> -> vector<8x96xf32>
    %c1_75 = arith.constant 1 : index
    %c0_76 = arith.constant 0 : index
    %c0_77 = arith.constant 0 : index
    %169 = vector.load %arg6[%c1_75, %c0_76, %c0_77] : memref<2x1x96xf32, #tpu.memory_space<vmem>>, vector<1x1x96xf32>
    %170 = vector.shape_cast %169 : vector<1x1x96xf32> to vector<1x96xf32>
    %171 = vector.broadcast %170 : vector<1x96xf32> to vector<8x96xf32>
    %172 = arith.addf %168, %171 : vector<8x96xf32>
    %173 = vector.extract_strided_slice %172 {offsets = [0, 0], sizes = [8, 8], strides = [1, 1]} : vector<8x96xf32> to vector<8x8xf32>
    %174 = vector.extract_strided_slice %172 {offsets = [0, 8], sizes = [8, 8], strides = [1, 1]} : vector<8x96xf32> to vector<8x8xf32>
    %175 = vector.extract_strided_slice %172 {offsets = [0, 16], sizes = [8, 8], strides = [1, 1]} : vector<8x96xf32> to vector<8x8xf32>
    %176 = vector.extract_strided_slice %172 {offsets = [0, 24], sizes = [8, 8], strides = [1, 1]} : vector<8x96xf32> to vector<8x8xf32>
    %177 = tpu.concatenate %173, %174, %175, %176 in 0 : vector<8x8xf32>, vector<8x8xf32>, vector<8x8xf32>, vector<8x8xf32> -> vector<32x8xf32>
    %178 = vector.extract_strided_slice %172 {offsets = [0, 32], sizes = [8, 8], strides = [1, 1]} : vector<8x96xf32> to vector<8x8xf32>
    %179 = vector.extract_strided_slice %172 {offsets = [0, 40], sizes = [8, 8], strides = [1, 1]} : vector<8x96xf32> to vector<8x8xf32>
    %180 = vector.extract_strided_slice %172 {offsets = [0, 48], sizes = [8, 8], strides = [1, 1]} : vector<8x96xf32> to vector<8x8xf32>
    %181 = vector.extract_strided_slice %172 {offsets = [0, 56], sizes = [8, 8], strides = [1, 1]} : vector<8x96xf32> to vector<8x8xf32>
    %182 = tpu.concatenate %178, %179, %180, %181 in 0 : vector<8x8xf32>, vector<8x8xf32>, vector<8x8xf32>, vector<8x8xf32> -> vector<32x8xf32>
    %183 = vector.extract_strided_slice %172 {offsets = [0, 64], sizes = [8, 8], strides = [1, 1]} : vector<8x96xf32> to vector<8x8xf32>
    %184 = vector.extract_strided_slice %172 {offsets = [0, 72], sizes = [8, 8], strides = [1, 1]} : vector<8x96xf32> to vector<8x8xf32>
    %185 = vector.extract_strided_slice %172 {offsets = [0, 80], sizes = [8, 8], strides = [1, 1]} : vector<8x96xf32> to vector<8x8xf32>
    %186 = vector.extract_strided_slice %172 {offsets = [0, 88], sizes = [8, 8], strides = [1, 1]} : vector<8x96xf32> to vector<8x8xf32>
    %187 = tpu.concatenate %183, %184, %185, %186 in 0 : vector<8x8xf32>, vector<8x8xf32>, vector<8x8xf32>, vector<8x8xf32> -> vector<32x8xf32>
    %188 = arith.truncf %177 : vector<32x8xf32> to vector<32x8xbf16>
    %189 = arith.truncf %182 : vector<32x8xf32> to vector<32x8xbf16>
    %cst_78 = arith.constant dense<0.000000e+00> : vector<32x32xf32>
    %190 = tpu.matmul %188, %189, %cst_78 {dimension_numbers = #tpu.dot_dimension_numbers<[1], [1], [0], [0], [0, 0, 1, 0], [], []>} : vector<32x8xbf16>, vector<32x8xbf16>, vector<32x32xf32> -> vector<32x32xf32>
    %191 = arith.addf %190, %2 : vector<32x32xf32>
    %cst_79 = arith.constant dense<0xFF800000> : vector<32xf32>
    %192 = vector.multi_reduction <maximumf>, %191, %cst_79 [1] : vector<32x32xf32> to vector<32xf32>
    %193 = vector.shape_cast %192 : vector<32xf32> to vector<32x1xf32>
    %194 = vector.broadcast %193 : vector<32x1xf32> to vector<32x32xf32>
    %195 = arith.subf %191, %194 : vector<32x32xf32>
    %196 = math.exp %195 : vector<32x32xf32>
    %cst_80 = arith.constant dense<0.000000e+00> : vector<32xf32>
    %197 = vector.multi_reduction <add>, %196, %cst_80 [1] : vector<32x32xf32> to vector<32xf32>
    %198 = vector.shape_cast %197 : vector<32xf32> to vector<32x1xf32>
    %199 = tpu.reciprocal %198 {approx = true} : vector<32x1xf32> -> vector<32x1xf32>
    %200 = vector.broadcast %199 : vector<32x1xf32> to vector<32x32xf32>
    %201 = arith.mulf %196, %200 : vector<32x32xf32>
    %202 = arith.truncf %201 : vector<32x32xf32> to vector<32x32xbf16>
    %203 = arith.truncf %187 : vector<32x8xf32> to vector<32x8xbf16>
    %cst_81 = arith.constant dense<0.000000e+00> : vector<32x8xf32>
    %204 = tpu.matmul %202, %203, %cst_81 {dimension_numbers = #tpu.dot_dimension_numbers<[1], [0], [0], [1], [0, 0, 1, 1], [], []>} : vector<32x32xbf16>, vector<32x8xbf16>, vector<32x8xf32> -> vector<32x8xf32>
    %205 = vector.extract_strided_slice %204 {offsets = [0, 0], sizes = [8, 8], strides = [1, 1]} : vector<32x8xf32> to vector<8x8xf32>
    %206 = vector.extract_strided_slice %204 {offsets = [8, 0], sizes = [8, 8], strides = [1, 1]} : vector<32x8xf32> to vector<8x8xf32>
    %207 = vector.extract_strided_slice %204 {offsets = [16, 0], sizes = [8, 8], strides = [1, 1]} : vector<32x8xf32> to vector<8x8xf32>
    %208 = vector.extract_strided_slice %204 {offsets = [24, 0], sizes = [8, 8], strides = [1, 1]} : vector<32x8xf32> to vector<8x8xf32>
    %209 = tpu.concatenate %205, %206, %207, %208 in 1 : vector<8x8xf32>, vector<8x8xf32>, vector<8x8xf32>, vector<8x8xf32> -> vector<8x32xf32>
    %210 = arith.truncf %209 : vector<8x32xf32> to vector<8x32xbf16>
    %c1_82 = arith.constant 1 : index
    %c0_83 = arith.constant 0 : index
    %c0_84 = arith.constant 0 : index
    %211 = vector.load %arg7[%c1_82, %c0_83, %c0_84] : memref<2x32x32xbf16, #tpu.memory_space<vmem>>, vector<1x32x32xbf16>
    %212 = vector.shape_cast %211 : vector<1x32x32xbf16> to vector<32x32xbf16>
    %cst_85 = arith.constant dense<0.000000e+00> : vector<8x32xf32>
    %213 = tpu.matmul %210, %212, %cst_85 {dimension_numbers = #tpu.dot_dimension_numbers<[1], [0], [0], [1], [0, 0, 1, 1], [], []>} : vector<8x32xbf16>, vector<32x32xbf16>, vector<8x32xf32> -> vector<8x32xf32>
    %214 = arith.addf %138, %213 : vector<8x32xf32>
    %c1_86 = arith.constant 1 : index
    %c0_87 = arith.constant 0 : index
    %c0_88 = arith.constant 0 : index
    %215 = vector.load %arg8[%c1_86, %c0_87, %c0_88] : memref<2x1x32xf32, #tpu.memory_space<vmem>>, vector<1x1x32xf32>
    %216 = vector.shape_cast %215 : vector<1x1x32xf32> to vector<1x32xf32>
    %217 = vector.broadcast %216 : vector<1x32xf32> to vector<8x32xf32>
    %218 = arith.addf %214, %217 : vector<8x32xf32>
    %c1_89 = arith.constant 1 : index
    %c0_90 = arith.constant 0 : index
    %c0_91 = arith.constant 0 : index
    %219 = vector.load %arg9[%c1_89, %c0_90, %c0_91] : memref<2x1x32xf32, #tpu.memory_space<vmem>>, vector<1x1x32xf32>
    %220 = vector.shape_cast %219 : vector<1x1x32xf32> to vector<1x32xf32>
    %c1_92 = arith.constant 1 : index
    %c0_93 = arith.constant 0 : index
    %c0_94 = arith.constant 0 : index
    %221 = vector.load %arg10[%c1_92, %c0_93, %c0_94] : memref<2x1x32xf32, #tpu.memory_space<vmem>>, vector<1x1x32xf32>
    %222 = vector.shape_cast %221 : vector<1x1x32xf32> to vector<1x32xf32>
    %cst_95 = arith.constant dense<0.000000e+00> : vector<8xf32>
    %223 = vector.multi_reduction <add>, %218, %cst_95 [1] : vector<8x32xf32> to vector<8xf32>
    %224 = vector.shape_cast %223 : vector<8xf32> to vector<8x1xf32>
    %cst_96 = arith.constant 3.200000e+01 : f32
    %225 = vector.broadcast %cst_96 : f32 to vector<8x1xf32>
    %226 = arith.divf %224, %225 : vector<8x1xf32>
    %227 = arith.mulf %218, %218 : vector<8x32xf32>
    %cst_97 = arith.constant dense<0.000000e+00> : vector<8xf32>
    %228 = vector.multi_reduction <add>, %227, %cst_97 [1] : vector<8x32xf32> to vector<8xf32>
    %229 = vector.shape_cast %228 : vector<8xf32> to vector<8x1xf32>
    %cst_98 = arith.constant 3.200000e+01 : f32
    %230 = vector.broadcast %cst_98 : f32 to vector<8x1xf32>
    %231 = arith.divf %229, %230 : vector<8x1xf32>
    %232 = arith.mulf %226, %226 : vector<8x1xf32>
    %233 = arith.subf %231, %232 : vector<8x1xf32>
    %234 = vector.broadcast %226 : vector<8x1xf32> to vector<8x32xf32>
    %235 = arith.subf %218, %234 : vector<8x32xf32>
    %cst_99 = arith.constant 9.99999974E-6 : f32
    %236 = vector.broadcast %cst_99 : f32 to vector<8x1xf32>
    %237 = arith.addf %233, %236 : vector<8x1xf32>
    %238 = math.rsqrt %237 : vector<8x1xf32>
    %239 = vector.broadcast %238 : vector<8x1xf32> to vector<8x32xf32>
    %240 = arith.mulf %235, %239 : vector<8x32xf32>
    %241 = vector.broadcast %220 : vector<1x32xf32> to vector<8x32xf32>
    %242 = arith.mulf %240, %241 : vector<8x32xf32>
    %243 = vector.broadcast %222 : vector<1x32xf32> to vector<8x32xf32>
    %244 = arith.addf %242, %243 : vector<8x32xf32>
    %245 = arith.truncf %244 : vector<8x32xf32> to vector<8x32xbf16>
    %c1_100 = arith.constant 1 : index
    %c0_101 = arith.constant 0 : index
    %c0_102 = arith.constant 0 : index
    %246 = vector.load %arg11[%c1_100, %c0_101, %c0_102] : memref<2x32x128xbf16, #tpu.memory_space<vmem>>, vector<1x32x128xbf16>
    %247 = vector.shape_cast %246 : vector<1x32x128xbf16> to vector<32x128xbf16>
    %cst_103 = arith.constant dense<0.000000e+00> : vector<8x128xf32>
    %248 = tpu.matmul %245, %247, %cst_103 {dimension_numbers = #tpu.dot_dimension_numbers<[1], [0], [0], [1], [0, 0, 1, 1], [], []>} : vector<8x32xbf16>, vector<32x128xbf16>, vector<8x128xf32> -> vector<8x128xf32>
    %c1_104 = arith.constant 1 : index
    %c0_105 = arith.constant 0 : index
    %c0_106 = arith.constant 0 : index
    %249 = vector.load %arg12[%c1_104, %c0_105, %c0_106] : memref<2x1x128xf32, #tpu.memory_space<vmem>>, vector<1x1x128xf32>
    %250 = vector.shape_cast %249 : vector<1x1x128xf32> to vector<1x128xf32>
    %251 = vector.broadcast %250 : vector<1x128xf32> to vector<8x128xf32>
    %252 = arith.addf %248, %251 : vector<8x128xf32>
    %cst_107 = arith.constant 5.000000e-01 : f32
    %253 = vector.broadcast %cst_107 : f32 to vector<8x128xf32>
    %254 = arith.mulf %253, %252 : vector<8x128xf32>
    %cst_108 = arith.constant 4.471500e-02 : f32
    %255 = vector.broadcast %cst_108 : f32 to vector<8x128xf32>
    %256 = arith.mulf %255, %252 : vector<8x128xf32>
    %257 = arith.mulf %256, %252 : vector<8x128xf32>
    %258 = arith.mulf %257, %252 : vector<8x128xf32>
    %259 = arith.addf %252, %258 : vector<8x128xf32>
    %cst_109 = arith.constant 0.797884583 : f32
    %260 = vector.broadcast %cst_109 : f32 to vector<8x128xf32>
    %261 = arith.mulf %260, %259 : vector<8x128xf32>
    %262 = math.tanh %261 : vector<8x128xf32>
    %cst_110 = arith.constant 1.000000e+00 : f32
    %263 = vector.broadcast %cst_110 : f32 to vector<8x128xf32>
    %264 = arith.addf %263, %262 : vector<8x128xf32>
    %265 = arith.mulf %254, %264 : vector<8x128xf32>
    %266 = arith.truncf %265 : vector<8x128xf32> to vector<8x128xbf16>
    %c1_111 = arith.constant 1 : index
    %c0_112 = arith.constant 0 : index
    %c0_113 = arith.constant 0 : index
    %267 = vector.load %arg13[%c1_111, %c0_112, %c0_113] : memref<2x128x32xbf16, #tpu.memory_space<vmem>>, vector<1x128x32xbf16>
    %268 = vector.shape_cast %267 : vector<1x128x32xbf16> to vector<128x32xbf16>
    %cst_114 = arith.constant dense<0.000000e+00> : vector<8x32xf32>
    %269 = tpu.matmul %266, %268, %cst_114 {dimension_numbers = #tpu.dot_dimension_numbers<[1], [0], [0], [1], [0, 0, 1, 1], [], []>} : vector<8x128xbf16>, vector<128x32xbf16>, vector<8x32xf32> -> vector<8x32xf32>
    %270 = arith.addf %218, %269 : vector<8x32xf32>
    %c1_115 = arith.constant 1 : index
    %c0_116 = arith.constant 0 : index
    %c0_117 = arith.constant 0 : index
    %271 = vector.load %arg14[%c1_115, %c0_116, %c0_117] : memref<2x1x32xf32, #tpu.memory_space<vmem>>, vector<1x1x32xf32>
    %272 = vector.shape_cast %271 : vector<1x1x32xf32> to vector<1x32xf32>
    %273 = vector.broadcast %272 : vector<1x32xf32> to vector<8x32xf32>
    %274 = arith.addf %270, %273 : vector<8x32xf32>
    %c0_118 = arith.constant 0 : index
    %c0_119 = arith.constant 0 : index
    %275 = vector.load %arg15[%c0_118, %c0_119] : memref<1x32xf32, #tpu.memory_space<vmem>>, vector<1x32xf32>
    %c0_120 = arith.constant 0 : index
    %c0_121 = arith.constant 0 : index
    %276 = vector.load %arg16[%c0_120, %c0_121] : memref<1x32xf32, #tpu.memory_space<vmem>>, vector<1x32xf32>
    %cst_122 = arith.constant dense<0.000000e+00> : vector<8xf32>
    %277 = vector.multi_reduction <add>, %274, %cst_122 [1] : vector<8x32xf32> to vector<8xf32>
    %278 = vector.shape_cast %277 : vector<8xf32> to vector<8x1xf32>
    %cst_123 = arith.constant 3.200000e+01 : f32
    %279 = vector.broadcast %cst_123 : f32 to vector<8x1xf32>
    %280 = arith.divf %278, %279 : vector<8x1xf32>
    %281 = arith.mulf %274, %274 : vector<8x32xf32>
    %cst_124 = arith.constant dense<0.000000e+00> : vector<8xf32>
    %282 = vector.multi_reduction <add>, %281, %cst_124 [1] : vector<8x32xf32> to vector<8xf32>
    %283 = vector.shape_cast %282 : vector<8xf32> to vector<8x1xf32>
    %cst_125 = arith.constant 3.200000e+01 : f32
    %284 = vector.broadcast %cst_125 : f32 to vector<8x1xf32>
    %285 = arith.divf %283, %284 : vector<8x1xf32>
    %286 = arith.mulf %280, %280 : vector<8x1xf32>
    %287 = arith.subf %285, %286 : vector<8x1xf32>
    %288 = vector.broadcast %280 : vector<8x1xf32> to vector<8x32xf32>
    %289 = arith.subf %274, %288 : vector<8x32xf32>
    %cst_126 = arith.constant 9.99999974E-6 : f32
    %290 = vector.broadcast %cst_126 : f32 to vector<8x1xf32>
    %291 = arith.addf %287, %290 : vector<8x1xf32>
    %292 = math.rsqrt %291 : vector<8x1xf32>
    %293 = vector.broadcast %292 : vector<8x1xf32> to vector<8x32xf32>
    %294 = arith.mulf %289, %293 : vector<8x32xf32>
    %295 = vector.broadcast %275 : vector<1x32xf32> to vector<8x32xf32>
    %296 = arith.mulf %294, %295 : vector<8x32xf32>
    %297 = vector.broadcast %276 : vector<1x32xf32> to vector<8x32xf32>
    %298 = arith.addf %296, %297 : vector<8x32xf32>
    %299 = arith.truncf %298 : vector<8x32xf32> to vector<8x32xbf16>
    %c0_127 = arith.constant 0 : index
    %c0_128 = arith.constant 0 : index
    %300 = vector.load %arg17[%c0_127, %c0_128] : memref<32x256xbf16, #tpu.memory_space<vmem>>, vector<32x256xbf16>
    %cst_129 = arith.constant dense<0.000000e+00> : vector<8x256xf32>
    %301 = tpu.matmul %299, %300, %cst_129 {dimension_numbers = #tpu.dot_dimension_numbers<[1], [0], [0], [1], [0, 0, 1, 1], [], []>} : vector<8x32xbf16>, vector<32x256xbf16>, vector<8x256xf32> -> vector<8x256xf32>
    %c0_130 = arith.constant 0 : index
    %c0_131 = arith.constant 0 : index
    %302 = vector.load %arg18[%c0_130, %c0_131] : memref<8x256xf32, #tpu.memory_space<vmem>>, vector<8x256xf32>
    tpu.vector_store %arg18[%c0_130, %c0_131], %301 {strides = array<i32>} : memref<8x256xf32, #tpu.memory_space<vmem>>, vector<8x256xf32>,
    return
  }
  func.func @transform_0(%arg0: i32) -> (i32, i32) {
    %c0_i32 = arith.constant 0 : i32
    %c0_i32_0 = arith.constant 0 : i32
    return %arg0, %c0_i32 : i32, i32
  }
  func.func @transform_1(%arg0: i32) -> (i32, i32, i32) {
    %c0_i32 = arith.constant 0 : i32
    %c0_i32_0 = arith.constant 0 : i32
    %c0_i32_1 = arith.constant 0 : i32
    return %arg0, %c0_i32, %c0_i32_0 : i32, i32, i32
  }
  func.func @transform_2(%arg0: i32) -> (i32, i32, i32) {
    %c0_i32 = arith.constant 0 : i32
    %c0_i32_0 = arith.constant 0 : i32
    %c0_i32_1 = arith.constant 0 : i32
    %c0_i32_2 = arith.constant 0 : i32
    return %c0_i32, %c0_i32_0, %c0_i32_1 : i32, i32, i32
  }
  func.func @transform_3(%arg0: i32) -> (i32, i32, i32) {
    %c0_i32 = arith.constant 0 : i32
    %c0_i32_0 = arith.constant 0 : i32
    %c0_i32_1 = arith.constant 0 : i32
    %c0_i32_2 = arith.constant 0 : i32
    return %c0_i32, %c0_i32_0, %c0_i32_1 : i32, i32, i32
  }
  func.func @transform_4(%arg0: i32) -> (i32, i32, i32) {
    %c0_i32 = arith.constant 0 : i32
    %c0_i32_0 = arith.constant 0 : i32
    %c0_i32_1 = arith.constant 0 : i32
    %c0_i32_2 = arith.constant 0 : i32
    return %c0_i32, %c0_i32_0, %c0_i32_1 : i32, i32, i32
  }
  func.func @transform_5(%arg0: i32) -> (i32, i32, i32) {
    %c0_i32 = arith.constant 0 : i32
    %c0_i32_0 = arith.constant 0 : i32
    %c0_i32_1 = arith.constant 0 : i32
    %c0_i32_2 = arith.constant 0 : i32
    return %c0_i32, %c0_i32_0, %c0_i32_1 : i32, i32, i32
  }
  func.func @transform_6(%arg0: i32) -> (i32, i32, i32) {
    %c0_i32 = arith.constant 0 : i32
    %c0_i32_0 = arith.constant 0 : i32
    %c0_i32_1 = arith.constant 0 : i32
    %c0_i32_2 = arith.constant 0 : i32
    return %c0_i32, %c0_i32_0, %c0_i32_1 : i32, i32, i32
  }
  func.func @transform_7(%arg0: i32) -> (i32, i32, i32) {
    %c0_i32 = arith.constant 0 : i32
    %c0_i32_0 = arith.constant 0 : i32
    %c0_i32_1 = arith.constant 0 : i32
    %c0_i32_2 = arith.constant 0 : i32
    return %c0_i32, %c0_i32_0, %c0_i32_1 : i32, i32, i32
  }
  func.func @transform_8(%arg0: i32) -> (i32, i32, i32) {
    %c0_i32 = arith.constant 0 : i32
    %c0_i32_0 = arith.constant 0 : i32
    %c0_i32_1 = arith.constant 0 : i32
    %c0_i32_2 = arith.constant 0 : i32
    return %c0_i32, %c0_i32_0, %c0_i32_1 : i32, i32, i32
  }
  func.func @transform_9(%arg0: i32) -> (i32, i32, i32) {
    %c0_i32 = arith.constant 0 : i32
    %c0_i32_0 = arith.constant 0 : i32
    %c0_i32_1 = arith.constant 0 : i32
    %c0_i32_2 = arith.constant 0 : i32
    return %c0_i32, %c0_i32_0, %c0_i32_1 : i32, i32, i32
  }
  func.func @transform_10(%arg0: i32) -> (i32, i32, i32) {
    %c0_i32 = arith.constant 0 : i32
    %c0_i32_0 = arith.constant 0 : i32
    %c0_i32_1 = arith.constant 0 : i32
    %c0_i32_2 = arith.constant 0 : i32
    return %c0_i32, %c0_i32_0, %c0_i32_1 : i32, i32, i32
  }
  func.func @transform_11(%arg0: i32) -> (i32, i32, i32) {
    %c0_i32 = arith.constant 0 : i32
    %c0_i32_0 = arith.constant 0 : i32
    %c0_i32_1 = arith.constant 0 : i32
    %c0_i32_2 = arith.constant 0 : i32
    return %c0_i32, %c0_i32_0, %c0_i32_1 : i32, i32, i32
  }
  func.func @transform_12(%arg0: i32) -> (i32, i32, i32) {
    %c0_i32 = arith.constant 0 : i32
    %c0_i32_0 = arith.constant 0 : i32
    %c0_i32_1 = arith.constant 0 : i32
    %c0_i32_2 = arith.constant 0 : i32
    return %c0_i32, %c0_i32_0, %c0_i32_1 : i32, i32, i32
  }
  func.func @transform_13(%arg0: i32) -> (i32, i32, i32) {
    %c0_i32 = arith.constant 0 : i32
    %c0_i32_0 = arith.constant 0 : i32
    %c0_i32_1 = arith.constant 0 : i32
    %c0_i32_2 = arith.constant 0 : i32
    return %c0_i32, %c0_i32_0, %c0_i32_1 : i32, i32, i32
  }
  func.func @transform_14(%arg0: i32) -> (i32, i32) {
    %c0_i32 = arith.constant 0 : i32
    %c0_i32_0 = arith.constant 0 : i32
    %c0_i32_1 = arith.constant 0 : i32
    return %c0_i32, %c0_i32_0 : i32, i32
  }
  func.func @transform_15(%arg0: i32) -> (i32, i32) {
    %c0_i32 = arith.constant 0 : i32
    %c0_i32_0 = arith.constant 0 : i32
    %c0_i32_1 = arith.constant 0 : i32
    return %c0_i32, %c0_i32_0 : i32, i32
  }
  func.func @transform_16(%arg0: i32) -> (i32, i32) {
    %c0_i32 = arith.constant 0 : i32
    %c0_i32_0 = arith.constant 0 : i32
    %c0_i32_1 = arith.constant 0 : i32
    return %c0_i32, %c0_i32_0 : i32, i32
  }
  func.func @transform_17(%arg0: i32) -> (i32, i32) {
    %c0_i32 = arith.constant 0 : i32
    %c0_i32_0 = arith.constant 0 : i32
    return %arg0, %c0_i32 : i32, i32
  }
}

</mosaic_0001>

<bundles_post_ra>
// kernel: gpt_forward.1
= control target key start
LH: loop header
LB: loop body
LE: loop exit
PB: predicated region body
PF: predicated region fallthrough
CT: control target
= control target key end

     0   :  { %s2492_s0 = inlined_call_operand.vmem [shape: f32[16,32], index: 0, kind: input, shape index: {}]   ;;  %s2493_s1 = inlined_call_operand.vmem [shape: f32[2,32,32], index: 1, kind: input, shape index: {}]   ;;  %s2494_s2 = inlined_call_operand.vmem [shape: f32[2,1,32], index: 2, kind: input, shape index: {}]   ;;  %s2495_s3 = inlined_call_operand.vmem [shape: f32[2,1,32], index: 3, kind: input, shape index: {}]   ;;  %s2496_s4 = inlined_call_operand.vmem [shape: bf16[2,32,96], index: 4, kind: input, shape index: {}]   ;;  %s2497_s5 = inlined_call_operand.vmem [shape: f32[2,1,96], index: 5, kind: input, shape index: {}]   ;;  %s2498_s6 = inlined_call_operand.vmem [shape: bf16[2,32,32], index: 6, kind: input, shape index: {}]   ;;  %s2499_s7 = inlined_call_operand.vmem [shape: f32[2,1,32], index: 7, kind: input, shape index: {}]   ;;  %s2500_s8 = inlined_call_operand.vmem [shape: f32[2,1,32], index: 8, kind: input, shape index: {}]   ;;  %s2501_s9 = inlined_call_operand.vmem [shape: f32[2,1,32], index: 9, kind: input, shape index: {}]   ;;  %s2502_s10 = inlined_call_operand.vmem [shape: bf16[2,32,128], index: 10, kind: input, shape index: {}]   ;;  %s2503_s11 = inlined_call_operand.vmem [shape: f32[2,1,128], index: 11, kind: input, shape index: {}]   ;;  %s2504_s12 = inlined_call_operand.vmem [shape: bf16[2,128,32], index: 12, kind: input, shape index: {}]   ;;  %s2505_s13 = inlined_call_operand.vmem [shape: f32[2,1,32], index: 13, kind: input, shape index: {}]   ;;  %s2506_s14 = inlined_call_operand.vmem [shape: f32[1,32], index: 14, kind: input, shape index: {}]   ;;  %s2507_s15 = inlined_call_operand.vmem [shape: f32[1,32], index: 15, kind: input, shape index: {}]   ;;  %s2508_s16 = inlined_call_operand.vmem [shape: bf16[32,256], index: 16, kind: input, shape index: {}]   ;;  %s2509_s17 = inlined_call_operand.hbm [shape: f32[16,256], index: 17, kind: output, shape index: {}]  }
   0x1   :  { %2524 = sst [smem:[#allocation9_spill]] %s2492_s0 }
   0x2   :  { %2525 = sst [smem:[#allocation10_spill]] %s2493_s1 }
   0x3   :  { %2526 = sst [smem:[#allocation11_spill]] %s2494_s2 }
   0x4   :  { %2527 = sst [smem:[#allocation12_spill]] %s2495_s3 }
   0x5   :  { %22 = vsyncpa [#allocation3], 0 }
   0x6   :  { %24 = vsyncpa [#allocation3 + $0x1], 0  ;;  %s2105_s24 = smov 0   ;;  %s2107_s25 = smov 0  }
   0x7   :  { %s2109_s26 = smov 0   ;;  %s2111_s27 = smov 0  }
   0x8 LB: > { %2528 = sst [smem:[#allocation5_spill]] %s2000_s26  ;;  %s2126_s28 = sadd.s32 4294967295, %s2004_s27   ;;  %s2004_s27 = sphi %s2111_s27, %s2547_s27   ;;  %s2000_s26 = sphi %s2109_s26, %s2549_s26   ;;  %s1996_s25 = sphi %s2107_s25, %s2551_s25   ;;  %s1992_s24 = sphi %s2105_s24, %s2550_s24  }
   0x9   : > { %s1601_s29 = sadd.s32 4294967294, %s2004_s27   ;;  %s2130_s0 = sadd.s32 1, %s2004_s27  }
   0xa   : > { %2529 = sst [smem:[#allocation6_spill]] %s2130_s0  ;;  %s404_s30 = sadd.s32 1, %s2000_s26 }
   0xb   : > { %s401_s18 = ssub.s32 %s2004_s27, %s2130_s0  ;;  %p414_p0 = scmp.ne.s32.totalorder %s2000_s26, %s1996_s25 }
   0xc   : > { %p402_p1 = scmp.eq.s32.totalorder %s401_s18, 0  ;;  %p415_p2 = scmp.eq.s32.totalorder %s2126_s28, 1 }
   0xd   : > { %p420_p3 = scmp.ne.s32.totalorder %s1996_s25, %s1992_s24  ;;  %p421_p4 = scmp.eq.s32.totalorder %s1601_s29, 1 }
   0xe   : > { %s2141_s19 = scalar_select %p402_p1, %s2000_s26, %s404_s30  }
   0xf   : > { %p2143_p5 = por %p415_p2, %p414_p0  ;;  %p2147_p6 = por %p421_p4, %p420_p3 }
  0x10   : > { %2530 = sst [smem:[#allocation7_spill]] %s2141_s19  ;;  %p1604_p7 = scmp.ge.s32.totalorder %s2004_s27, 1 }
  0x11   : > { %s2532_s20 = scalar_select %p2147_p6, 1, 0 }
  0x12   : > { %p499_p8 = scmp.lt.s32.totalorder %s2004_s27, 3 }
  0x13   : > { %2533 = sst [smem:[#allocation8_spill]] %s2532_s20 }
  0x14   : > { %p500_p9 = pnand %p1604_p7, %p499_p8 }
  0x15   : > { %p555_p10 = scmp.lt.s32.totalorder (!%p500_p9), %s2126_s28, 1  ;;  %s2534_s30 = sld [smem:[#allocation9_spill]] (!%p500_p9) }
  0x16   : > { %503 = sbr.rel (%p500_p9) target bundleno = 3837 (0xefd), region = 88  ;;  %s2535_s2 = sld [smem:[#allocation11_spill]] (!%p500_p9) }
  0x17   : > { %s2536_s3 = sld [smem:[#allocation12_spill]] (!%p500_p9)  ;;  %s2520_s26 = smov (!%p500_p9), 120  }
  0x18   : > { %s2515_s23 = smov (!%p500_p9), 96   ;;  %s2540_s29 = smov (!%p500_p9), 112  }
  0x19   : > { %s2544_s0 = smov (!%p500_p9), 16   ;;  %s2545_s20 = smov (!%p500_p9), 24  }
  0x1b   : > { %s2155_s21 = scalar_select %p555_p10, %s2126_s28, 1  ;;  %vm572_vm0 = vcmask 261120   ;;  %v2006_v4 = vmov 32.0   ;;  %v1796_v10 = vld [vmem:[%s2496_s4 + $0x8] sm:$0xff]  ;;  %v1795_v12 = vld [vmem:[%s2496_s4] sm:$0xff]  ;;  %vm667_vm5 = vcmask 64512  }
  0x1c   : > { %1894 = vrcp.f32 %v2006_v4  ;;  %642 = vmatpush.bf16.msra.mxu0 %v1796_v10  ;;  %v1876_v27 = vld [vmem:[%s2535_s2] ss:$0 sm:$0xff]  ;;  %vm789_vm6 = vcmask 130048   ;;  %vm791_vm7 = vcmask 195584  }
  0x1d   : > { %s1606_s22 = sshll.u32 %s2155_s21, 3  ;;  %v1877_v30 = vld [vmem:[%s2536_s3] ss:$0 sm:$0xff]  ;;  %s1794_s19 = sshll.u32 %s2155_s21, 5 }
  0x1e   : > { %s558_s18 = scalar_lea.vmem %s2534_s30, %s1606_s22  ;;  %v1878_v34 = vld [vmem:[%s2497_s5] ss:$0 sm:$0xff]  ;;  %s2512_s22 = smov 104  }
  0x1f   : > { %v2161_v0 = vld [vmem:[%s558_s18] sm:$0xff]  ;;  %s2511_s18 = smov 112   ;;  %s2513_s21 = smov 64  }
  0x20   : > { %v573_v1 = vsel %vm572_vm0, %v2161_v0, 0.0  ;;  %v584_v2 = vmul.f32 %v2161_v0, %v2161_v0  ;;  %643 = vmatpush.bf16.msra.mxu0 %v1795_v12  ;;  %s2541_s30 = smov 96  }
  0x21   : > { %574 = vadd.xlane.f32.xlu0 %v573_v1 }
  0x22   : > { %v585_v3 = vsel %vm572_vm0, %v584_v2, 0.0  ;;  %v1895_v5 = vpop.eup %1894 }
  0x23   : > { %v577_v6 = vmul.f32 32.0, %v1895_v5  ;;  %vm581_vm1 = vweird.f32 %v1895_v5 }
  0x25   : > { %v578_v7 = vsub.f32 1.0, %v577_v6 }
  0x27   : > { %v579_v8 = vmul.f32 %v1895_v5, %v578_v7 }
  0x29   : > { %586 = vadd.xlane.f32.xlu0 %v585_v3  ;;  %v580_v9 = vadd.f32 %v1895_v5, %v579_v8 }
  0x2b   : > { %v2174_v13 = vsel %vm581_vm1, %v1895_v5, %v580_v9 }
  0x94   : > { %v575_v11 = vpop.xlane.xlu0 %574 }
  0x95   : > { %v583_v14 = vmul.f32 %v2174_v13, %v575_v11 }
  0x97   : > { %v589_v16 = vmul.f32 %v583_v14, %v583_v14  ;;  %v591_v26 = vsub.f32 %v2161_v0, %v583_v14 }
  0x9c   : > { %v587_v15 = vpop.xlane.xlu0 %586 }
  0x9d   : > { %v588_v17 = vmul.f32 %v587_v15, %v2174_v13 }
  0x9f   : > { %v590_v18 = vsub.f32 %v588_v17, %v589_v16 }
  0xa1   : > { %v592_v19 = vadd.f32 1e-05, %v590_v18 }
  0xa3   : > { %1896 = vrsqrt.f32 %v592_v19  ;;  %vm599_vm3 = vweird.f32 %v592_v19 }
  0xa9   : > { %v1897_v20 = vpop.eup %1896 }
  0xaa   : > { %v594_v21 = vmul.f32 %v1897_v20, %v592_v19  ;;  %vm600_vm2 = vweird.f32 %v1897_v20 }
  0xab   : > { %vm601_vm4 = vmor %vm599_vm3, %vm600_vm2 }
  0xac   : > { %v595_v22 = vmul.f32 %v1897_v20, %v594_v21 }
  0xae   : > { %v596_v23 = vmul.f32 0.5, %v595_v22 }
  0xb0   : > { %v597_v24 = vsub.f32 1.5, %v596_v23 }
  0xb2   : > { %v598_v25 = vmul.f32 %v1897_v20, %v597_v24 }
  0xb4   : > { %v602_v28 = vsel %vm601_vm4, %v1897_v20, %v598_v25 }
  0xb5   : > { %v603_v29 = vmul.f32 %v602_v28, %v591_v26 }
  0xb7   : > { %v607_v31 = vmul.f32 %v1876_v27, %v603_v29 }
  0xb9   : > { %v611_v32 = vadd.f32 %v1877_v30, %v607_v31 }
  0xbb   : > { %v612_v33 = vpack.c.bf16 %v611_v32, %v611_v32 }
  0xbd   : > { %1617 = vmatmul.msk.bf16.vlgmr.msra.gmra.mxu0 %vm572_vm0, %v612_v33 }
 0x13a   : > { %v645_v35 = vpop.f32.mrf.mxu0 }
 0x13b   : > { %v646_v36 = vadd.f32 %v1878_v34, %v645_v35 }
 0x13d   : > { %650 = vrot.lane.b32.xlu2 %v646_v36, %s2520_s26  ;;  %653 = vrot.lane.b32.xlu1 %v646_v36, %s2511_s18  ;;  %s2537_s18 = sld [smem:[#allocation10_spill]] }
 0x142   : > { %v647_v37 = vpop.f32.mrf.mxu0 }
 0x145   : > { %656 = vrot.lane.b32.xlu1 %v646_v36, %s2512_s22  ;;  %s563_s22 = scalar_lea.vmem %s2537_s18, %s1794_s19  ;;  %s2519_s18 = smov 8  }
 0x146   : > { %v2206_v47 = vld [vmem:[%s563_s22] sm:$0xff]  ;;  %v2210_v51 = vld [vmem:[%s563_s22 + $0x8] sm:$0xff]  ;;  %v2214_v55 = vld [vmem:[%s563_s22 + $0x10] sm:$0xff]  ;;  %s2517_s19 = smov 24  }
 0x147   : > { %v2218_v59 = vld [vmem:[%s563_s22 + $0x18] sm:$0xff]  ;;  %s2518_s22 = smov 16  }
 0x197   : > { %v651_v38 = vpop.permute.xlu2 %650 }
 0x198   : > { %v2192_v39 = vpack.c.bf16 %v651_v38, %v646_v36 }
 0x19a   : > { %663 = vrot.lane.b32.xlu0 %v2192_v39, %s2515_s23 }
 0x1af   : > { %v654_v40 = vpop.permute.xlu1 %653 }
 0x1b7   : > { %v657_v41 = vpop.permute.xlu1 %656 }
 0x1b8   : > { %v660_v42 = vpack.c.bf16 %v657_v41, %v654_v40  ;;  %v1798_v41 = vld [vmem:[%s2498_s6 + $0x8] sm:$0xff] }
 0x1b9   : > { %819 = vmatpush.bf16.msra.mxu3 %v1798_v41 }
 0x1ba   : > { %665 = vrot.lane.b32.xlu2 %v660_v42, %s2515_s23  ;;  %s2542_s23 = smov 64  }
 0x20c   : > { %v664_v45 = vpop.permute.xlu0 %663 }
 0x20d   : > { %v675_v46 = vsel %vm667_vm5, %v664_v45, 0 }
 0x214   : > { %v666_v43 = vpop.permute.xlu2 %665 }
 0x215   : > { %v678_v44 = vsel %vm667_vm5, %v666_v43, 0 }
 0x216   : > { %686 = vmatpush.bf16.xpose.msra.mxu1 %v678_v44 }
 0x21e   : > { %687 = vmatpush.bf16.xpose.msra.mxu1 %v675_v46 }
 0x225   : > { %1618 = vmatmul.msk.bf16.vlgmr.msra.gmra.mxu1 %vm667_vm5, %v2192_v39 }
 0x235   : > { %1619 = vmatmul.msk.bf16.gmra.mxu1 %vm667_vm5, %v660_v42 }
 0x2a2   : > { %v689_v48 = vpop.f32.mrf.mxu1 }
 0x2a3   : > { %v690_v49 = vadd.f32 %v689_v48, %v2206_v47 }
 0x2a5   : > { %v699_v50 = vsel %vm572_vm0, %v690_v49, -inf }
 0x2a6   : > { %700 = vmax.xlane.f32.xlu1 %v699_v50 }
 0x2aa   : > { %v691_v52 = vpop.f32.mrf.mxu1 }
 0x2ab   : > { %v692_v53 = vadd.f32 %v691_v52, %v2210_v51  ;;  %v1879_v52 = vld [vmem:[%s2499_s7] ss:$0 sm:$0xff] }
 0x2ad   : > { %v702_v54 = vsel %vm572_vm0, %v692_v53, -inf }
 0x2ae   : > { %703 = vmax.xlane.f32.xlu2 %v702_v54 }
 0x2b2   : > { %v694_v56 = vpop.f32.mrf.mxu1 }
 0x2b3   : > { %v695_v57 = vadd.f32 %v694_v56, %v2214_v55 }
 0x2b5   : > { %v705_v58 = vsel %vm572_vm0, %v695_v57, -inf }
 0x2b6   : > { %706 = vmax.xlane.f32.xlu0 %v705_v58 }
 0x2ba   : > { %v696_v60 = vpop.f32.mrf.mxu1 }
 0x2bb   : > { %v697_v61 = vadd.f32 %v696_v60, %v2218_v59 }
 0x2bd   : > { %v708_v62 = vsel %vm572_vm0, %v697_v61, -inf }
 0x2be   : > { %709 = vmax.xlane.f32.xlu2 %v708_v62  ;;  %v1800_v62 = vld [vmem:[%s2502_s10 + $0x8] sm:$0xff] }
 0x2bf   : > { %896 = vmatpush.bf16.msrb.mxu0 %v1800_v62 }
 0x319   : > { %v701_v63 = vpop.xlane.xlu1 %700 }
 0x31a   : > { %v711_v1 = vsub.f32 %v690_v49, %v701_v63 }
 0x31c   : > { %v715_v2 = vmul.f32 1.442695, %v711_v1 }
 0x31e   : > { %1898 = vpow2.f32 %v715_v2 }
 0x321   : > { %v704_v3 = vpop.xlane.xlu2 %703 }
 0x322   : > { %v712_v4 = vsub.f32 %v692_v53, %v704_v3 }
 0x324   : > { %v1899_v5 = vpop.eup %1898  ;;  %v717_v6 = vmul.f32 1.442695, %v712_v4 }
 0x325   : > { %v723_v7 = vsel %vm572_vm0, %v1899_v5, 0.0 }
 0x326   : > { %1900 = vpow2.f32 %v717_v6  ;;  %724 = vadd.xlane.f32.xlu1 %v723_v7  ;;  %v1807_v7 = vld [vmem:[%s2504_s12 + $0x30] sm:$0xff] }
 0x329   : > { %v707_v8 = vpop.xlane.xlu0 %706 }
 0x32a   : > { %v713_v9 = vsub.f32 %v695_v57, %v707_v8 }
 0x32c   : > { %v1901_v10 = vpop.eup %1900  ;;  %v719_v11 = vmul.f32 1.442695, %v713_v9 }
 0x32d   : > { %v726_v12 = vsel %vm572_vm0, %v1901_v10, 0.0 }
 0x32e   : > { %1902 = vpow2.f32 %v719_v11  ;;  %727 = vadd.xlane.f32.xlu2 %v726_v12 }
 0x331   : > { %v710_v14 = vpop.xlane.xlu2 %709 }
 0x332   : > { %v714_v15 = vsub.f32 %v697_v61, %v710_v14 }
 0x334   : > { %v1903_v16 = vpop.eup %1902  ;;  %v721_v17 = vmul.f32 1.442695, %v714_v15 }
 0x335   : > { %v729_v18 = vsel %vm572_vm0, %v1903_v16, 0.0 }
 0x336   : > { %1904 = vpow2.f32 %v721_v17  ;;  %730 = vadd.xlane.f32.xlu0 %v729_v18  ;;  %v1880_v17 = vld [vmem:[%s2500_s8] ss:$0 sm:$0xff] }
 0x33c   : > { %v1905_v19 = vpop.eup %1904 }
 0x33d   : > { %v732_v20 = vsel %vm572_vm0, %v1905_v19, 0.0 }
 0x33e   : > { %733 = vadd.xlane.f32.xlu0 %v732_v20  ;;  %v1881_v20 = vld [vmem:[%s2501_s9] ss:$0 sm:$0xff] }
 0x33f   : > { %747 = vrot.lane.b32.xlu1 %v660_v42, %s2513_s21  ;;  %v1797_v42 = vld [vmem:[%s2498_s6] sm:$0xff] }
 0x340   : > { %820 = vmatpush.bf16.msra.mxu3 %v1797_v42 }
 0x346   : > { %745 = vrot.lane.b32.xlu2 %v2192_v39, %s2513_s21 }
 0x399   : > { %v725_v22 = vpop.xlane.xlu1 %724 }
 0x3a1   : > { %v728_v21 = vpop.xlane.xlu2 %727 }
 0x3a2   : > { %1906 = vrcp.f32 %v728_v21 }
 0x3a3   : > { %1908 = vrcp.f32 %v725_v22 }
 0x3a8   : > { %v1907_v24 = vpop.eup %1906 }
 0x3a9   : > { %v731_v23 = vpop.xlane.xlu0 %730  ;;  %v1909_v26 = vpop.eup %1908  ;;  %v740_v27 = vmul.f32 %v1907_v24, %v1901_v10  ;;  %v1806_v24 = vld [vmem:[%s2504_s12 + $0x28] sm:$0xff] }
 0x3aa   : > { %v746_v28 = vpop.permute.xlu2 %745  ;;  %v739_v29 = vmul.f32 %v1909_v26, %v1899_v5  ;;  %v1808_v5 = vld [vmem:[%s2504_s12 + $0x38] sm:$0xff] }
 0x3ab   : > { %v1804_v26 = vld [vmem:[%s2504_s12 + $0x18] sm:$0xff] }
 0x3ac   : > { %v743_v31 = vpack.c.bf16 %v740_v27, %v739_v29  ;;  %v1803_v27 = vld [vmem:[%s2504_s12 + $0x10] sm:$0xff]  ;;  %v1801_v29 = vld [vmem:[%s2504_s12] sm:$0xff] }
 0x3b1   : > { %v748_v25 = vpop.permute.xlu1 %747  ;;  %v734_v30 = vpop.xlane.xlu0 %733 }
 0x3b2   : > { %763 = vmatpush.bf16.msra.mxu2 %v748_v25  ;;  %1910 = vrcp.f32 %v734_v30  ;;  %v1805_v25 = vld [vmem:[%s2504_s12 + $0x20] sm:$0xff] }
 0x3b3   : > { %1912 = vrcp.f32 %v731_v23  ;;  %v1882_v30 = vld [vmem:[%s2503_s11] ss:$0 sm:$0xff] }
 0x3b6   : > { %764 = vmatpush.bf16.msra.mxu2 %v746_v28  ;;  %v1802_v28 = vld [vmem:[%s2504_s12 + $0x8] sm:$0xff] }
 0x3b8   : > { %v1911_v32 = vpop.eup %1910 }
 0x3b9   : > { %1620 = vmatmul.msk.bf16.vlgmr.msra.gmra.mxu2 %vm572_vm0, %v743_v31  ;;  %v1913_v33 = vpop.eup %1912  ;;  %v742_v34 = vmul.f32 %v1911_v32, %v1905_v19 }
 0x3ba   : > { %v741_v35 = vmul.f32 %v1913_v33, %v1903_v16  ;;  %977 = vmatpush.bf16.msrb.mxu2 %v1808_v5 }
 0x3bc   : > { %v744_v36 = vpack.c.bf16 %v742_v34, %v741_v35 }
 0x3be   : > { %978 = vmatpush.bf16.msrb.mxu2 %v1807_v7 }
 0x3c2   : > { %979 = vmatpush.bf16.msrb.mxu2 %v1806_v24 }
 0x3c6   : > { %980 = vmatpush.bf16.msrb.mxu2 %v1805_v25 }
 0x3c9   : > { %1621 = vmatmul.msk.bf16.gmra.mxu2 %vm572_vm0, %v744_v36 }
 0x3ca   : > { %981 = vmatpush.bf16.msrb.mxu2 %v1804_v26 }
 0x3ce   : > { %982 = vmatpush.bf16.msrb.mxu2 %v1803_v27 }
 0x3d2   : > { %983 = vmatpush.bf16.msrb.mxu2 %v1802_v28 }
 0x3d6   : > { %984 = vmatpush.bf16.msrb.mxu2 %v1801_v29 }
 0x43c   : > { %v766_v37 = vpop.f32.mrf.mxu2 }
 0x444   : > { %v768_v38 = vpop.f32.mrf.mxu2 }
 0x445   : > { %777 = vrot.lane.b32.xlu1 %v768_v38, %s2519_s18  ;;  %s2543_s18 = smov 8  }
 0x44c   : > { %v771_v39 = vpop.f32.mrf.mxu2 }
 0x44d   : > { %781 = vrot.lane.b32.xlu0 %v771_v39, %s2518_s22  ;;  %s2538_s22 = smov 120  }
 0x454   : > { %v773_v40 = vpop.f32.mrf.mxu2 }
 0x455   : > { %785 = vrot.lane.b32.xlu2 %v773_v40, %s2517_s19  ;;  %s2539_s19 = smov 104  }
 0x4af   : > { %v786_v46 = vpop.permute.xlu2 %785 }
 0x4b7   : > { %v778_v43 = vpop.permute.xlu1 %777 }
 0x4b8   : > { %v788_v44 = vsel %vm667_vm5, %v766_v37, %v778_v43 }
 0x4bf   : > { %v782_v45 = vpop.permute.xlu0 %781 }
 0x4c0   : > { %v790_v48 = vsel %vm789_vm6, %v788_v44, %v782_v45  ;;  %v1883_v44 = vld [vmem:[%s2505_s13] ss:$0 sm:$0xff] }
 0x4c1   : > { %v792_v49 = vsel %vm791_vm7, %v790_v48, %v786_v46 }
 0x4c2   : > { %v793_v50 = vpack.c.bf16 %v792_v49, %v792_v49 }
 0x4c4   : > { %1630 = vmatmul.msk.bf16.vlgmr.msra.gmra.mxu3 %vm572_vm0, %v793_v50 }
 0x547   : > { %v822_v53 = vpop.f32.mrf.mxu3 }
 0x548   : > { %v826_v54 = vadd.f32 %v822_v53, %v2161_v0  ;;  %v1799_v0 = vld [vmem:[%s2502_s10] sm:$0xff] }
 0x549   : > { %897 = vmatpush.bf16.msrb.mxu0 %v1799_v0 }
 0x54a   : > { %v2248_v56 = vadd.f32 %v1879_v52, %v826_v54  ;;  %v1810_v54 = vld [vmem:[%s2496_s4 + $0x18] sm:$0xff] }
 0x54b   : > { %1064 = vmatpush.bf16.msrb.mxu3 %v1810_v54 }
 0x54c   : > { %v834_v57 = vsel %vm572_vm0, %v2248_v56, 0.0  ;;  %v838_v58 = vmul.f32 %v2248_v56, %v2248_v56 }
 0x54d   : > { %835 = vadd.xlane.f32.xlu1 %v834_v57 }
 0x54e   : > { %v839_v60 = vsel %vm572_vm0, %v838_v58, 0.0 }
 0x54f   : > { %840 = vadd.xlane.f32.xlu2 %v839_v60  ;;  %v824_v61 = vpop.f32.mrf.mxu3 }
 0x5c0   : > { %v836_v63 = vpop.xlane.xlu1 %835 }
 0x5c1   : > { %v837_v1 = vmul.f32 %v836_v63, %v2174_v13 }
 0x5c2   : > { %v841_v2 = vpop.xlane.xlu2 %840 }
 0x5c3   : > { %v843_v3 = vmul.f32 %v837_v1, %v837_v1  ;;  %v842_v4 = vmul.f32 %v841_v2, %v2174_v13  ;;  %v845_v16 = vsub.f32 %v2248_v56, %v837_v1 }
 0x5c5   : > { %v844_v6 = vsub.f32 %v842_v4, %v843_v3 }
 0x5c7   : > { %v846_v8 = vadd.f32 1e-05, %v844_v6 }
 0x5c9   : > { %1914 = vrsqrt.f32 %v846_v8  ;;  %vm853_vm9 = vweird.f32 %v846_v8 }
 0x5cf   : > { %v1915_v9 = vpop.eup %1914 }
 0x5d0   : > { %v848_v10 = vmul.f32 %v1915_v9, %v846_v8  ;;  %vm854_vm8 = vweird.f32 %v1915_v9  ;;  %v1884_v8 = vld [vmem:[%s2535_s2 + $0x1] ss:$0 sm:$0xff] }
 0x5d1   : > { %vm855_vm10 = vmor %vm853_vm9, %vm854_vm8 }
 0x5d2   : > { %v849_v11 = vmul.f32 %v1915_v9, %v848_v10 }
 0x5d4   : > { %v850_v12 = vmul.f32 0.5, %v849_v11  ;;  %v1885_v11 = vld [vmem:[%s2536_s3 + $0x1] ss:$0 sm:$0xff] }
 0x5d6   : > { %v851_v14 = vsub.f32 1.5, %v850_v12 }
 0x5d8   : > { %v852_v15 = vmul.f32 %v1915_v9, %v851_v14 }
 0x5da   : > { %v856_v18 = vsel %vm855_vm10, %v1915_v9, %v852_v15 }
 0x5db   : > { %v857_v19 = vmul.f32 %v856_v18, %v845_v16  ;;  %v1886_v16 = vld [vmem:[%s2497_s5 + $0x1] ss:$0 sm:$0xff] }
 0x5dd   : > { %v861_v21 = vmul.f32 %v1880_v17, %v857_v19 }
 0x5df   : > { %v865_v22 = vadd.f32 %v1881_v20, %v861_v21 }
 0x5e1   : > { %v866_v23 = vpack.c.bf16 %v865_v22, %v865_v22 }
 0x5e3   : > { %1639 = vmatmul.msk.bf16.vlgmr.msrb.gmra.mxu0 %vm572_vm0, %v866_v23 }
 0x660   : > { %v899_v31 = vpop.f32.mrf.mxu0 }
 0x661   : > { %v900_v32 = vadd.f32 %v1882_v30, %v899_v31 }
 0x663   : > { %v904_v33 = vmul.f32 0.044715, %v900_v32  ;;  %v903_v40 = vmul.f32 0.5, %v900_v32 }
 0x665   : > { %v905_v34 = vmul.f32 %v904_v33, %v900_v32 }
 0x667   : > { %v906_v35 = vmul.f32 %v905_v34, %v900_v32 }
 0x668   : > { %v901_v36 = vpop.f32.mrf.mxu0 }
 0x669   : > { %v907_v37 = vadd.f32 %v906_v35, %v900_v32 }
 0x66b   : > { %v908_v38 = vmul.f32 0.7978846, %v907_v37 }
 0x66d   : > { %1916 = vtanh.f32 %v908_v38 }
 0x673   : > { %v1917_v39 = vpop.eup %1916 }
 0x674   : > { %v910_v41 = vadd.f32 1.0, %v1917_v39 }
 0x676   : > { %v911_v42 = vmul.f32 %v910_v41, %v903_v40 }
 0x678   : > { %v912_v43 = vpack.c.bf16 %v911_v42, %v911_v42 }
 0x67a   : > { %985 = vmatmul.bf16.vlgmr.msrb.gmra.mxu2 %v912_v43 }
 0x6fd   : > { %v986_v45 = vpop.f32.mrf.mxu2 }
 0x6fe   : > { %v990_v46 = vadd.f32 %v986_v45, %v2248_v56  ;;  %v1809_v56 = vld [vmem:[%s2496_s4 + $0x10] sm:$0xff] }
 0x6ff   : > { %1065 = vmatpush.bf16.msrb.mxu3 %v1809_v56 }
 0x700   : > { %v2302_v48 = vadd.f32 %v1883_v44, %v990_v46 }
 0x702   : > { %v1000_v49 = vsel %vm572_vm0, %v2302_v48, 0.0  ;;  %v1004_v50 = vmul.f32 %v2302_v48, %v2302_v48 }
 0x703   : > { %1001 = vadd.xlane.f32.xlu0 %v1000_v49 }
 0x704   : > { %v1005_v52 = vsel %vm572_vm0, %v1004_v50, 0.0 }
 0x705   : > { %1006 = vadd.xlane.f32.xlu1 %v1005_v52  ;;  %v988_v53 = vpop.f32.mrf.mxu2 }
 0x776   : > { %v1002_v57 = vpop.xlane.xlu0 %1001 }
 0x777   : > { %v1003_v58 = vmul.f32 %v1002_v57, %v2174_v13 }
 0x778   : > { %v1007_v60 = vpop.xlane.xlu1 %1006 }
 0x779   : > { %v1009_v61 = vmul.f32 %v1003_v58, %v1003_v58  ;;  %v1008_v62 = vmul.f32 %v1007_v60, %v2174_v13  ;;  %v1011_v7 = vsub.f32 %v2302_v48, %v1003_v58 }
 0x77b   : > { %v1010_v0 = vsub.f32 %v1008_v62, %v1009_v61 }
 0x77d   : > { %v1012_v63 = vadd.f32 1e-05, %v1010_v0 }
 0x77f   : > { %1918 = vrsqrt.f32 %v1012_v63  ;;  %vm1019_vm12 = vweird.f32 %v1012_v63 }
 0x785   : > { %v1919_v1 = vpop.eup %1918 }
 0x786   : > { %v1014_v2 = vmul.f32 %v1919_v1, %v1012_v63  ;;  %vm1020_vm11 = vweird.f32 %v1919_v1 }
 0x787   : > { %vm1021_vm13 = vmor %vm1019_vm12, %vm1020_vm11 }
 0x788   : > { %v1015_v3 = vmul.f32 %v1919_v1, %v1014_v2 }
 0x78a   : > { %v1016_v4 = vmul.f32 0.5, %v1015_v3 }
 0x78c   : > { %v1017_v5 = vsub.f32 1.5, %v1016_v4 }
 0x78e   : > { %v1018_v6 = vmul.f32 %v1919_v1, %v1017_v5 }
 0x790   : > { %v1022_v9 = vsel %vm1021_vm13, %v1919_v1, %v1018_v6 }
 0x791   : > { %v1023_v10 = vmul.f32 %v1022_v9, %v1011_v7 }
 0x793   : > { %v1027_v12 = vmul.f32 %v1884_v8, %v1023_v10 }
 0x795   : > { %v1031_v14 = vadd.f32 %v1885_v11, %v1027_v12 }
 0x797   : > { %v1032_v15 = vpack.c.bf16 %v1031_v14, %v1031_v14 }
 0x799   : > { %1687 = vmatmul.msk.bf16.vlgmr.msrb.gmra.mxu3 %vm572_vm0, %v1032_v15  ;;  %v1812_v15 = vld [vmem:[%s2498_s6 + $0x18] sm:$0xff] }
 0x79a   : > { %1239 = vmatpush.bf16.msrb.mxu1 %v1812_v15 }
 0x81c   : > { %v1067_v17 = vpop.f32.mrf.mxu3 }
 0x81d   : > { %v1068_v18 = vadd.f32 %v1886_v16, %v1067_v17 }
 0x81f   : > { %1072 = vrot.lane.b32.xlu0 %v1068_v18, %s2538_s22  ;;  %1078 = vrot.lane.b32.xlu1 %v1068_v18, %s2539_s19 }
 0x820   : > { %1075 = vrot.lane.b32.xlu2 %v1068_v18, %s2540_s29  ;;  %s552_s29 = sand.u32 1, %s1996_s25  }
 0x821   : > { %s1514_s19 = scalar_lea.sflag [#allocation3], %s552_s29 }
 0x824   : > { %v1069_v19 = vpop.f32.mrf.mxu3 }
 0x87a   : > { %v1076_v20 = vpop.permute.xlu2 %1075 }
 0x891   : > { %v1073_v21 = vpop.permute.xlu0 %1072  ;;  %v1079_v22 = vpop.permute.xlu1 %1078 }
 0x892   : > { %v1081_v23 = vpack.c.bf16 %v1073_v21, %v1068_v18  ;;  %v1082_v24 = vpack.c.bf16 %v1079_v22, %v1076_v20  ;;  %v1811_v20 = vld [vmem:[%s2498_s6 + $0x10] sm:$0xff] }
 0x893   : > { %1240 = vmatpush.bf16.msrb.mxu1 %v1811_v20 }
 0x894   : > { %1085 = vrot.lane.b32.xlu1 %v1081_v23, %s2541_s30  ;;  %1087 = vrot.lane.b32.xlu2 %v1082_v24, %s2541_s30  ;;  %s1605_s30 = sshll.u32 %s552_s29, 4 }
 0x8ee   : > { %v1088_v25 = vpop.permute.xlu2 %1087 }
 0x8ef   : > { %v1099_v26 = vsel %vm667_vm5, %v1088_v25, 0 }
 0x8f0   : > { %1107 = vmatpush.bf16.xpose.msra.mxu0 %v1099_v26 }
 0x906   : > { %v1086_v27 = vpop.permute.xlu1 %1085 }
 0x907   : > { %v1096_v28 = vsel %vm667_vm5, %v1086_v27, 0 }
 0x908   : > { %1108 = vmatpush.bf16.xpose.msra.mxu0 %v1096_v28  ;;  %v1887_v28 = vld [vmem:[%s2499_s7 + $0x1] ss:$0 sm:$0xff] }
 0x90f   : > { %1688 = vmatmul.msk.bf16.vlgmr.msra.gmra.mxu0 %vm667_vm5, %v1081_v23 }
 0x91f   : > { %1689 = vmatmul.msk.bf16.gmra.mxu0 %vm667_vm5, %v1082_v24 }
 0x98c   : > { %v1110_v29 = vpop.f32.mrf.mxu0 }
 0x98d   : > { %v1111_v30 = vadd.f32 %v1110_v29, %v2206_v47 }
 0x98f   : > { %v1120_v31 = vsel %vm572_vm0, %v1111_v30, -inf }
 0x990   : > { %1121 = vmax.xlane.f32.xlu0 %v1120_v31 }
 0x994   : > { %v1112_v32 = vpop.f32.mrf.mxu0 }
 0x995   : > { %v1113_v33 = vadd.f32 %v1112_v32, %v2210_v51 }
 0x997   : > { %v1123_v34 = vsel %vm572_vm0, %v1113_v33, -inf }
 0x998   : > { %1124 = vmax.xlane.f32.xlu2 %v1123_v34 }
 0x99c   : > { %v1115_v35 = vpop.f32.mrf.mxu0 }
 0x99d   : > { %v1116_v36 = vadd.f32 %v1115_v35, %v2214_v55 }
 0x99f   : > { %v1126_v37 = vsel %vm572_vm0, %v1116_v36, -inf }
 0x9a0   : > { %1127 = vmax.xlane.f32.xlu1 %v1126_v37 }
 0x9a4   : > { %v1117_v38 = vpop.f32.mrf.mxu0 }
 0x9a5   : > { %v1118_v39 = vadd.f32 %v1117_v38, %v2218_v59 }
 0x9a7   : > { %v1129_v47 = vsel %vm572_vm0, %v1118_v39, -inf }
 0x9a8   : > { %1130 = vmax.xlane.f32.xlu0 %v1129_v47 }
 0x9bc   : > { %1168 = vrot.lane.b32.xlu0 %v1082_v24, %s2542_s23 }
 0xa03   : > { %v1122_v40 = vpop.xlane.xlu0 %1121 }
 0xa04   : > { %v1132_v41 = vsub.f32 %v1111_v30, %v1122_v40 }
 0xa06   : > { %v1136_v51 = vmul.f32 1.442695, %v1132_v41  ;;  %v1822_v41 = vld [vmem:[%s2504_s12 + $0x78] sm:$0xff] }
 0xa07   : > { %1403 = vmatpush.bf16.msrb.mxu0 %v1822_v41 }
 0xa08   : > { %1920 = vpow2.f32 %v1136_v51 }
 0xa0b   : > { %v1125_v42 = vpop.xlane.xlu2 %1124 }
 0xa0c   : > { %v1133_v43 = vsub.f32 %v1113_v33, %v1125_v42  ;;  %v1821_v42 = vld [vmem:[%s2504_s12 + $0x70] sm:$0xff] }
 0xa0d   : > { %1404 = vmatpush.bf16.msrb.mxu0 %v1821_v42 }
 0xa0e   : > { %v1921_v44 = vpop.eup %1920  ;;  %v1138_v45 = vmul.f32 1.442695, %v1133_v43 }
 0xa0f   : > { %v1144_v55 = vsel %vm572_vm0, %v1921_v44, 0.0 }
 0xa10   : > { %1922 = vpow2.f32 %v1138_v45  ;;  %1145 = vadd.xlane.f32.xlu2 %v1144_v55 }
 0xa13   : > { %v1128_v46 = vpop.xlane.xlu1 %1127 }
 0xa14   : > { %v1134_v49 = vsub.f32 %v1116_v36, %v1128_v46  ;;  %v1814_v36 = vld [vmem:[%s2502_s10 + $0x18] sm:$0xff] }
 0xa15   : > { %1321 = vmatpush.bf16.msra.mxu2 %v1814_v36  ;;  %v1824_v36 = vld [vmem:[%s2508_s16 + $0x4] sm:$0xf0] }
 0xa16   : > { %v1923_v59 = vpop.eup %1922  ;;  %v1140_v50 = vmul.f32 1.442695, %v1134_v49 }
 0xa17   : > { %v1147_v52 = vsel %vm572_vm0, %v1923_v59, 0.0 }
 0xa18   : > { %1924 = vpow2.f32 %v1140_v50  ;;  %1148 = vadd.xlane.f32.xlu1 %v1147_v52  ;;  %v1888_v52 = vld [vmem:[%s2500_s8 + $0x1] ss:$0 sm:$0xff] }
 0xa1b   : > { %v1131_v53 = vpop.xlane.xlu0 %1130 }
 0xa1c   : > { %v1135_v54 = vsub.f32 %v1118_v39, %v1131_v53 }
 0xa1e   : > { %v1925_v56 = vpop.eup %1924  ;;  %v1142_v57 = vmul.f32 1.442695, %v1135_v54 }
 0xa1f   : > { %v1150_v58 = vsel %vm572_vm0, %v1925_v56, 0.0 }
 0xa20   : > { %1926 = vpow2.f32 %v1142_v57  ;;  %1151 = vadd.xlane.f32.xlu1 %v1150_v58 }
 0xa26   : > { %v1927_v60 = vpop.eup %1926 }
 0xa27   : > { %v1153_v61 = vsel %vm572_vm0, %v1927_v60, 0.0 }
 0xa28   : > { %1166 = vrot.lane.b32.xlu2 %v1081_v23, %s2542_s23  ;;  %1154 = vadd.xlane.f32.xlu1 %v1153_v61  ;;  %v1820_v61 = vld [vmem:[%s2504_s12 + $0x68] sm:$0xff]  ;;  %s1827_s23 = sshll.u32 %s2126_s28, 4 }
 0xa29   : > { %1405 = vmatpush.bf16.msrb.mxu0 %v1820_v61 }
 0xa2e   : > { %v1169_v62 = vpop.permute.xlu0 %1168 }
 0xa2f   : > { %1184 = vmatpush.bf16.msra.mxu3 %v1169_v62  ;;  %v1819_v62 = vld [vmem:[%s2504_s12 + $0x60] sm:$0xff] }
 0xa30   : > { %1406 = vmatpush.bf16.msrb.mxu0 %v1819_v62 }
 0xa83   : > { %v1146_v0 = vpop.xlane.xlu2 %1145 }
 0xa84   : > { %1928 = vrcp.f32 %v1146_v0  ;;  %v1818_v0 = vld [vmem:[%s2504_s12 + $0x58] sm:$0xff] }
 0xa85   : > { %1407 = vmatpush.bf16.msrb.mxu0 %v1818_v0 }
 0xa8a   : > { %v1929_v2 = vpop.eup %1928 }
 0xa8b   : > { %v1149_v63 = vpop.xlane.xlu1 %1148  ;;  %v1167_v1 = vpop.permute.xlu2 %1166  ;;  %v1160_v4 = vmul.f32 %v1929_v2, %v1921_v44  ;;  %v1815_v2 = vld [vmem:[%s2504_s12 + $0x40] sm:$0xff] }
 0xa8c   : > { %1930 = vrcp.f32 %v1149_v63  ;;  %1185 = vmatpush.bf16.msra.mxu3 %v1167_v1  ;;  %v1817_v63 = vld [vmem:[%s2504_s12 + $0x50] sm:$0xff]  ;;  %v1816_v1 = vld [vmem:[%s2504_s12 + $0x48] sm:$0xff] }
 0xa8d   : > { %1408 = vmatpush.bf16.msrb.mxu0 %v1817_v63 }
 0xa91   : > { %1409 = vmatpush.bf16.msrb.mxu0 %v1816_v1 }
 0xa92   : > { %v1931_v3 = vpop.eup %1930 }
 0xa93   : > { %v1161_v5 = vmul.f32 %v1931_v3, %v1923_v59  ;;  %v1152_v6 = vpop.xlane.xlu1 %1151  ;;  %v1890_v3 = vld [vmem:[%s2503_s11 + $0x1] ss:$0 sm:$0xff] }
 0xa94   : > { %1932 = vrcp.f32 %v1152_v6 }
 0xa95   : > { %v1164_v7 = vpack.c.bf16 %v1161_v5, %v1160_v4  ;;  %1410 = vmatpush.bf16.msrb.mxu0 %v1815_v2 }
 0xa97   : > { %1690 = vmatmul.msk.bf16.vlgmr.msra.gmra.mxu3 %vm572_vm0, %v1164_v7 }
 0xa9a   : > { %v1933_v9 = vpop.eup %1932 }
 0xa9b   : > { %v1155_v8 = vpop.xlane.xlu1 %1154  ;;  %v1162_v11 = vmul.f32 %v1933_v9, %v1925_v56  ;;  %v1889_v56 = vld [vmem:[%s2501_s9 + $0x1] ss:$0 sm:$0xff] }
 0xa9c   : > { %1934 = vrcp.f32 %v1155_v8 }
 0xaa2   : > { %v1935_v10 = vpop.eup %1934 }
 0xaa3   : > { %v1163_v12 = vmul.f32 %v1935_v10, %v1927_v60 }
 0xaa5   : > { %v1165_v14 = vpack.c.bf16 %v1163_v12, %v1162_v11 }
 0xaa7   : > { %1691 = vmatmul.msk.bf16.gmra.mxu3 %vm572_vm0, %v1165_v14 }
 0xb1a   : > { %v1187_v16 = vpop.f32.mrf.mxu3 }
 0xb22   : > { %v1189_v17 = vpop.f32.mrf.mxu3 }
 0xb23   : > { %1198 = vrot.lane.b32.xlu0 %v1189_v17, %s2543_s18  ;;  %s1525_s18 = scalar_lea.hbm %s2509_s17, %s1827_s23 }
 0xb24   : > { %s1529_s22 = sshll.u32 %s1525_s18, 4  ;;  %s1530_s22 = int_to_ptr.hbm [resolvable:$true] %s1529_s22 }
 0xb25   : > { %s1956_s2 = sshra.s32 %s1530_s22, 4  ;;  %s1957_s2 = int_to_ptr.hbm [resolvable:$true] %s1956_s2 }
 0xb26   : > { %s1958_s3 = scalar_lea.hbm %s1957_s2, 16  ;;  %p1963_p0 = scmp.lt.s32.totalorder %s1957_s2, %s2509_s17 }
 0xb27   : > { %p1959_p11 = scmp.ne.s32.totalorder %s1957_s2, %s1958_s3 }
 0xb29   : > { %p1960_p12 = pnand %p1959_p11, %p2143_p5 }
 0xb2a   : > { %v1192_v18 = vpop.f32.mrf.mxu3 }
 0xb2b   : > { %1202 = vrot.lane.b32.xlu1 %v1192_v18, %s2544_s0  ;;  %v1891_v18 = vld [vmem:[%s2505_s13 + $0x1] ss:$0 sm:$0xff]  ;;  %s554_s0 = scalar_lea.vmem [#allocation2], %s1605_s30  ;;  %p1961_p13 = pneg %p1960_p12 }
 0xb2c   : > { %s1962_s30 = scalar_lea.hbm %s2509_s17, 32 }
 0xb2d   : > { %p1964_p1 = scmp.lt.s32.totalorder %s1962_s30, %s1958_s3 }
 0xb2f   : > { %p1965_p2 = por %p1964_p1, %p1963_p0 }
 0xb31   : > { %p1966_p3 = pnand %p1965_p2, %p1961_p13 }
 0xb32   : > { %v1194_v19 = vpop.f32.mrf.mxu3 }
 0xb33   : > { %1206 = vrot.lane.b32.xlu2 %v1194_v19, %s2545_s20  ;;  %s1527_s20 = sshll.u32 %s554_s0, 4  ;;  %s1528_s20 = int_to_ptr.vmem [resolvable:$true] %s1527_s20 }
 0xb8d   : > { %v1207_v24 = vpop.permute.xlu2 %1206 }
 0xb95   : > { %v1199_v21 = vpop.permute.xlu0 %1198 }
 0xb96   : > { %v1209_v22 = vsel %vm667_vm5, %v1187_v16, %v1199_v21 }
 0xb9d   : > { %v1203_v23 = vpop.permute.xlu1 %1202 }
 0xb9e   : > { %v1210_v25 = vsel %vm789_vm6, %v1209_v22, %v1203_v23 }
 0xb9f   : > { %v1211_v26 = vsel %vm791_vm7, %v1210_v25, %v1207_v24 }
 0xba0   : > { %v1212_v27 = vpack.c.bf16 %v1211_v26, %v1211_v26  ;;  %v1825_v26 = vld [vmem:[%s2508_s16 + $0x14] sm:$0xf] }
 0xba2   : > { %1704 = vmatmul.msk.bf16.vlgmr.msrb.gmra.mxu1 %vm572_vm0, %v1212_v27  ;;  %v1783_v27 = vld [vmem:[%s2508_s16 + $0x18] sm:$0xf0] }
 0xc1f   : > { %v1242_v29 = vpop.f32.mrf.mxu1 }
 0xc20   : > { %v1246_v30 = vadd.f32 %v1242_v29, %v2302_v48  ;;  %v1813_v48 = vld [vmem:[%s2502_s10 + $0x10] sm:$0xff]  ;;  %v1786_v29 = vor.u32 %v1825_v26, %v1783_v27 }
 0xc21   : > { %1322 = vmatpush.bf16.msra.mxu2 %v1813_v48 }
 0xc22   : > { %v2370_v31 = vadd.f32 %v1887_v28, %v1246_v30  ;;  %v1781_v28 = vld [vmem:[%s2508_s16 + $0x10] sm:$0xf]  ;;  %v1826_v30 = vld [vmem:[%s2508_s16 + $0x14] sm:$0xf0] }
 0xc24   : > { %v1257_v32 = vsel %vm572_vm0, %v2370_v31, 0.0  ;;  %v1261_v33 = vmul.f32 %v2370_v31, %v2370_v31 }
 0xc25   : > { %1258 = vadd.xlane.f32.xlu0 %v1257_v32  ;;  %1504 = vmatpush.bf16.msrb.mxu2 %v1786_v29  ;;  %v1823_v32 = vld [vmem:[%s2508_s16 + $0x4] sm:$0xf] }
 0xc26   : > { %v1262_v34 = vsel %vm572_vm0, %v1261_v33, 0.0  ;;  %v1775_v33 = vld [vmem:[%s2508_s16 + $0x8] sm:$0xf0] }
 0xc27   : > { %1263 = vadd.xlane.f32.xlu2 %v1262_v34  ;;  %v1244_v35 = vpop.f32.mrf.mxu1  ;;  %v1773_v34 = vld [vmem:[%s2508_s16] sm:$0xf] }
 0xc28   : > { %v1778_v35 = vor.u32 %v1823_v32, %v1775_v33  ;;  %v1774_v48 = vor.u32 %v1824_v36, %v1773_v34 }
 0xc2a   : > { %1505 = vmatpush.bf16.msrb.mxu2 %v1778_v35 }
 0xc98   : > { %v1259_v37 = vpop.xlane.xlu0 %1258 }
 0xc99   : > { %v1260_v38 = vmul.f32 %v1259_v37, %v2174_v13 }
 0xc9a   : > { %v1264_v39 = vpop.xlane.xlu2 %1263 }
 0xc9b   : > { %v1266_v47 = vmul.f32 %v1260_v38, %v1260_v38  ;;  %v1265_v40 = vmul.f32 %v1264_v39, %v2174_v13  ;;  %v1268_v50 = vsub.f32 %v2370_v31, %v1260_v38 }
 0xc9d   : > { %v1267_v51 = vsub.f32 %v1265_v40, %v1266_v47 }
 0xc9f   : > { %v1269_v43 = vadd.f32 1e-05, %v1267_v51 }
 0xca1   : > { %1936 = vrsqrt.f32 %v1269_v43  ;;  %vm1276_vm15 = vweird.f32 %v1269_v43 }
 0xca7   : > { %v1937_v44 = vpop.eup %1936 }
 0xca8   : > { %v1271_v45 = vmul.f32 %v1937_v44, %v1269_v43  ;;  %vm1277_vm14 = vweird.f32 %v1937_v44 }
 0xca9   : > { %vm1278_vm1 = vmor %vm1276_vm15, %vm1277_vm14 }
 0xcaa   : > { %v1272_v55 = vmul.f32 %v1937_v44, %v1271_v45 }
 0xcac   : > { %v1273_v46 = vmul.f32 0.5, %v1272_v55 }
 0xcae   : > { %v1274_v49 = vsub.f32 1.5, %v1273_v46 }
 0xcb0   : > { %v1275_v59 = vmul.f32 %v1937_v44, %v1274_v49 }
 0xcb2   : > { %v1279_v53 = vsel %vm1278_vm1, %v1937_v44, %v1275_v59  ;;  %v1892_v59 = vld [vmem:[%s2506_s14] ss:$0 sm:$0xff] }
 0xcb3   : > { %v1280_v54 = vmul.f32 %v1279_v53, %v1268_v50 }
 0xcb5   : > { %v1284_v57 = vmul.f32 %v1888_v52, %v1280_v54  ;;  %v1893_v52 = vld [vmem:[%s2507_s15] ss:$0 sm:$0xff] }
 0xcb7   : > { %v1288_v58 = vadd.f32 %v1889_v56, %v1284_v57 }
 0xcb9   : > { %v1289_v60 = vpack.c.bf16 %v1288_v58, %v1288_v58 }
 0xcbb   : > { %1721 = vmatmul.msk.bf16.vlgmr.msra.gmra.mxu2 %vm572_vm0, %v1289_v60 }
 0xd3e   : > { %v1324_v4 = vpop.f32.mrf.mxu2 }
 0xd3f   : > { %v1325_v5 = vadd.f32 %v1890_v3, %v1324_v4 }
 0xd41   : > { %v1329_v6 = vmul.f32 0.044715, %v1325_v5  ;;  %v1328_v14 = vmul.f32 0.5, %v1325_v5 }
 0xd43   : > { %v1330_v7 = vmul.f32 %v1329_v6, %v1325_v5 }
 0xd45   : > { %v1331_v8 = vmul.f32 %v1330_v7, %v1325_v5 }
 0xd46   : > { %v1326_v9 = vpop.f32.mrf.mxu2 }
 0xd47   : > { %v1332_v10 = vadd.f32 %v1331_v8, %v1325_v5 }
 0xd49   : > { %v1333_v11 = vmul.f32 0.7978846, %v1332_v10 }
 0xd4b   : > { %1938 = vtanh.f32 %v1333_v11 }
 0xd51   : > { %v1939_v12 = vpop.eup %1938 }
 0xd52   : > { %v1335_v15 = vadd.f32 1.0, %v1939_v12 }
 0xd54   : > { %v1336_v16 = vmul.f32 %v1335_v15, %v1328_v14 }
 0xd56   : > { %v1337_v17 = vpack.c.bf16 %v1336_v16, %v1336_v16 }
 0xd58   : > { %1411 = vmatmul.bf16.vlgmr.msrb.gmra.mxu0 %v1337_v17 }
 0xdd5   : > { %v1412_v19 = vpop.f32.mrf.mxu0 }
 0xdd6   : > { %v1416_v20 = vadd.f32 %v1412_v19, %v2370_v31  ;;  %v1782_v31 = vor.u32 %v1826_v30, %v1781_v28 }
 0xdd8   : > { %v1422_v21 = vadd.f32 %v1891_v18, %v1416_v20  ;;  %1491 = vmatpush.bf16.msra.mxu1 %v1782_v31 }
 0xdda   : > { %v1425_v22 = vsel %vm572_vm0, %v1422_v21, 0.0  ;;  %v1429_v23 = vmul.f32 %v1422_v21, %v1422_v21 }
 0xddb   : > { %1426 = vadd.xlane.f32.xlu1 %v1425_v22 }
 0xddc   : > { %v1430_v24 = vsel %vm572_vm0, %v1429_v23, 0.0  ;;  %1492 = vmatpush.bf16.msra.mxu1 %v1774_v48 }
 0xddd   : > { %1431 = vadd.xlane.f32.xlu0 %v1430_v24  ;;  %v1414_v25 = vpop.f32.mrf.mxu0 }
 0xe4e   : > { %v1427_v37 = vpop.xlane.xlu1 %1426 }
 0xe4f   : > { %v1428_v38 = vmul.f32 %v1427_v37, %v2174_v13 }
 0xe50   : > { %v1432_v39 = vpop.xlane.xlu0 %1431 }
 0xe51   : > { %v1434_v47 = vmul.f32 %v1428_v38, %v1428_v38  ;;  %v1433_v40 = vmul.f32 %v1432_v39, %v2174_v13  ;;  %v1436_v49 = vsub.f32 %v1422_v21, %v1428_v38 }
 0xe53   : > { %v1435_v41 = vsub.f32 %v1433_v40, %v1434_v47 }
 0xe55   : > { %v1437_v51 = vadd.f32 1e-05, %v1435_v41 }
 0xe57   : > { %1940 = vrsqrt.f32 %v1437_v51  ;;  %vm1444_vm3 = vweird.f32 %v1437_v51 }
 0xe5d   : > { %v1941_v42 = vpop.eup %1940 }
 0xe5e   : > { %v1439_v43 = vmul.f32 %v1941_v42, %v1437_v51  ;;  %vm1445_vm2 = vweird.f32 %v1941_v42 }
 0xe5f   : > { %vm1446_vm4 = vmor %vm1444_vm3, %vm1445_vm2 }
 0xe60   : > { %v1440_v44 = vmul.f32 %v1941_v42, %v1439_v43 }
 0xe62   : > { %v1441_v45 = vmul.f32 0.5, %v1440_v44 }
 0xe64   : > { %v1442_v55 = vsub.f32 1.5, %v1441_v45 }
 0xe66   : > { %v1443_v46 = vmul.f32 %v1941_v42, %v1442_v55 }
 0xe68   : > { %v1447_v13 = vsel %vm1446_vm4, %v1941_v42, %v1443_v46 }
 0xe69   : > { %v1448_v50 = vmul.f32 %v1447_v13, %v1436_v49 }
 0xe6b   : > { %v1452_v53 = vmul.f32 %v1892_v59, %v1448_v50 }
 0xe6d   : > { %v1456_v54 = vadd.f32 %v1893_v52, %v1452_v53 }
 0xe6f   : > { %v1457_v56 = vpack.c.bf16 %v1456_v54, %v1456_v54 }
 0xe71   : > { %1787 = vmatmul.msk.bf16.vlgmr.msra.gmra.mxu1 %vm572_vm0, %v1457_v56  ;;  %1788 = vmatmul.msk.bf16.vlgmr.msrb.gmra.mxu2 %vm572_vm0, %v1457_v56 }
 0xeee   : > { %v1494_v57 = vpop.f32.mrf.mxu1 }
 0xeef   : > { %1511 = vst [vmem:[%s554_s0] sm:$0xff] %v1494_v57 }
 0xef4   : > { %v1507_v58 = vpop.f32.mrf.mxu2 }
 0xef5   : > { %1512 = vst [vmem:[%s554_s0 + $0x8] sm:$0xff] %v1507_v58 }
 0xef6   : > { %v1496_v60 = vpop.f32.mrf.mxu1 }
 0xef7   : > { %1969 = shalt.err (!%p1966_p3)
}
 0xef8   : > { %1828 = dma.vmem_to_hbm [thread:$0]  (%p2143_p5), %s1528_s20, 256, %s1530_s22, %s1514_s19  }
 0xefc   : > { %v1509_v61 = vpop.f32.mrf.mxu2 }
 0xefd PF: > { %p1834_p4 = scmp.ge.s32.totalorder %s2004_s27, 2  ;;  %s1541_s18 = sand.u32 1, %s1992_s24  }
 0xefe   : > { %s1542_s0 = scalar_lea.sflag [#allocation3], %s1541_s18 }
 0xeff   : > { %p1831_p7 = pnand %p1834_p4, %p2147_p6 }
 0xf01   : > { %p1832_p8 = pneg %p1831_p7 }
 0xf03   : > { %1987 = dma.done.wait (%p1832_p8), %s1542_s0, 256  }
 0xf04   : > { %1989 = vsyncadd (%p1832_p8), %s1542_s0, 4294967040  ;;  %s2547_s27 = sld [smem:[#allocation6_spill]]  ;;  %s2550_s24 = smov %s1996_s25 }
 0xf05   : > { %s2548_s2 = sld [smem:[#allocation5_spill]] }
 0xf06   : > { %s2549_s26 = sld [smem:[#allocation7_spill]] }
 0xf0a   : > { %p27_p9 = scmp.ge.s32.totalorder %s2547_s27, 4  }
 0xf0b   : > { %s2551_s25 = smov %s2548_s2 }
 0xf0c   :  { %29 = sbr.rel (!%p27_p9) target bundleno = 8 (0x8), region = 138 }
 0xf11   :  { %1548 = vsyncpa [#allocation3], 1 }
 0xf12   :  { %1550 = vsyncpa [#allocation3 + $0x1], 1 }

</bundles_post_ra>
